<compile_context>
chip_gen: v6e
topology: v6e:2x2x1
jax: 0.10.0
libtpu: 0.0.40
codegen_flags: <defaults>
</compile_context>

<pallas_src>
import math
from functools import partial

import numpy as np
import jax
import jax.numpy as jnp
from jax.experimental import pallas as pl
from jax.experimental.pallas import tpu as pltpu


_VMEM = pl.BlockSpec(memory_space=pltpu.MemorySpace.VMEM)


# --------------------------------------------------------------------------
# Pallas kernels
# --------------------------------------------------------------------------
def _mlp2_kernel(x_ref, w1_ref, b1_ref, w2_ref, b2_ref, o_ref):
    # nn.Sequential(Linear, ReLU(True), Linear) fused into one kernel.
    h = jnp.dot(x_ref[...], w1_ref[...], preferred_element_type=jnp.float32) + b1_ref[...]
    h = jnp.maximum(h, 0.0)
    y = jnp.dot(h, w2_ref[...], preferred_element_type=jnp.float32) + b2_ref[...]
    o_ref[...] = y.astype(o_ref.dtype)


def pallas_mlp2(x, p1, p2):
    M = x.shape[0]
    N = p2["w"].shape[1]
    return pl.pallas_call(
        _mlp2_kernel,
        out_shape=jax.ShapeDtypeStruct((M, N), jnp.float32),
        in_specs=[_VMEM] * 5,
        out_specs=_VMEM,
    )(x, p1["w"], p1["b"], p2["w"], p2["b"])


def _prelu_linear_kernel(x_ref, w_ref, b_ref, o_ref):
    # nn.Sequential(ReLU(True), Linear) fused into one kernel.
    x = jnp.maximum(x_ref[...], 0.0)
    y = jnp.dot(x, w_ref[...], preferred_element_type=jnp.float32) + b_ref[...]
    o_ref[...] = y.astype(o_ref.dtype)


def pallas_prelu_linear(x, p):
    M = x.shape[0]
    N = p["w"].shape[1]
    return pl.pallas_call(
        _prelu_linear_kernel,
        out_shape=jax.ShapeDtypeStruct((M, N), jnp.float32),
        in_specs=[_VMEM] * 3,
        out_specs=_VMEM,
    )(x, p["w"], p["b"])


def _collect_kernel(tgt_ref, src_ref, adj_ref, wfc_ref, bfc_ref,
                    wq_ref, bq_ref, wkv_ref, bkv_ref, wo_ref, bo_ref,
                    o_ref, *, num_heads, head_dim):
    """Fused prepare_message: fc+relu, Q/KV proj, masked MHA, out-proj, zeroing."""
    adj = adj_ref[...]                                       # (Nt, Ns)
    nbr_mask = adj > 0.0                                     # hoisted out of head loop
    active = jnp.sum(adj, axis=1, keepdims=True) > 0.0       # (Nt, 1) — valid_mp rows

    # relu(trans_fc(source))
    src = jnp.dot(src_ref[...], wfc_ref[...], preferred_element_type=jnp.float32) + bfc_ref[...]
    src = jnp.maximum(src, 0.0)

    # Q from target (pre-scaled); K|V from source as one (Ns, E) @ (E, 2E) matmul.
    scale = jnp.float32(1.0 / math.sqrt(head_dim))
    q = (jnp.dot(tgt_ref[...], wq_ref[...], preferred_element_type=jnp.float32)
         + bq_ref[...]) * scale
    kv = jnp.dot(src, wkv_ref[...], preferred_element_type=jnp.float32) + bkv_ref[...]
    E = num_heads * head_dim
    k = kv[:, :E]
    v = kv[:, E:]

    neg = jnp.float32(-1e30)
    heads_out = []
    for h in range(num_heads):                               # static unrolled head loop
        lo, hi = h * head_dim, (h + 1) * head_dim
        s = jnp.dot(q[:, lo:hi], k[:, lo:hi].T, preferred_element_type=jnp.float32)
        s = jnp.where(nbr_mask, s, neg)
        m = jnp.max(s, axis=-1, keepdims=True)
        p = jnp.exp(s - m)
        denom = jnp.sum(p, axis=-1, keepdims=True)
        p = p * pl.reciprocal(denom, approx=True)            # EUP slot
        heads_out.append(jnp.dot(p, v[:, lo:hi], preferred_element_type=jnp.float32))
    att = jnp.concatenate(heads_out, axis=-1)                # (Nt, E), lane-dense

    out = jnp.dot(att, wo_ref[...], preferred_element_type=jnp.float32) + bo_ref[...]
    o_ref[...] = jnp.where(active, out, 0.0).astype(o_ref.dtype)


def pallas_collect(target, source, adj, unit, num_heads):
    """One GraphConvolutionCollectLayer unit, fully fused."""
    Nt = target.shape[0]
    E = unit["q"]["w"].shape[1]
    hd = E // num_heads
    return pl.pallas_call(
        partial(_collect_kernel, num_heads=num_heads, head_dim=hd),
        out_shape=jax.ShapeDtypeStruct((Nt, E), jnp.float32),
        in_specs=[_VMEM] * 11,
        out_specs=_VMEM,
    )(target, source, adj,
      unit["fc"]["w"], unit["fc"]["b"],
      unit["q"]["w"], unit["q"]["b"],
      unit["kv"]["w"], unit["kv"]["b"],
      unit["o"]["w"], unit["o"]["b"])


# --------------------------------------------------------------------------
# Parameter init (deterministic, synthetic)
# --------------------------------------------------------------------------
def init_linear(key, d_in, d_out, scale=0.05):
    kw, kb = jax.random.split(key)
    return {"w": jax.random.normal(kw, (d_in, d_out), jnp.float32) * scale,
            "b": jax.random.normal(kb, (1, d_out), jnp.float32) * scale}


def init_collect_unit(key, d_src, d_embed, scale=0.05):
    kf, kq, kk, kv, ko = jax.random.split(key, 5)
    k_p = init_linear(kk, d_embed, d_embed, scale)
    v_p = init_linear(kv, d_embed, d_embed, scale)
    return {"fc": init_linear(kf, d_src, d_embed, scale),
            "q": init_linear(kq, d_embed, d_embed, scale),
            # K and V projections concatenated -> single matmul in-kernel.
            "kv": {"w": jnp.concatenate([k_p["w"], v_p["w"]], axis=1),
                   "b": jnp.concatenate([k_p["b"], v_p["b"]], axis=1)},
            "o": init_linear(ko, d_embed, d_embed, scale)}


def init_collect_layer(key, dim_obj, dim_rel):
    # unit order: REL2SUB, REL2OBJ, SUB2REL, OBJ2REL, INST2INST
    ks = jax.random.split(key, 5)
    return [init_collect_unit(ks[0], dim_rel, dim_obj),
            init_collect_unit(ks[1], dim_rel, dim_obj),
            init_collect_unit(ks[2], dim_obj, dim_rel),
            init_collect_unit(ks[3], dim_obj, dim_rel),
            init_collect_unit(ks[4], dim_obj, dim_obj)]


# --------------------------------------------------------------------------
# GRCNN forward (jitted; all heavy math in Pallas kernels, glue fused by XLA)
# --------------------------------------------------------------------------
def grcnn_forward(params, inst_feats, rel_feats, subj_map, obj_map, obj_obj_map,
                  *, feat_steps, score_steps, heads_feat, heads_score):
    # embeddings
    x_obj = pallas_mlp2(inst_feats, params["obj_emb"][0], params["obj_emb"][1])
    x_pred = pallas_mlp2(rel_feats, params["rel_emb"][0], params["rel_emb"][1])

    # valid-row masks, derived directly from adjacency (identical to the
    # valid_mp_idx returned by the corresponding collect units)
    act_objr = (jnp.sum(obj_map, axis=1) > 0.0)[:, None]     # REL2OBJ targets (objects)
    act_s2r = (jnp.sum(subj_map, axis=0) > 0.0)[:, None]     # SUB2REL targets (relations)
    subj_map_t = subj_map.T
    obj_map_t = obj_map.T

    # ---- feature level agcn ----
    obj_f, pred_f = x_obj, x_pred
    cf = params["collect_feat"]
    for _ in range(feat_steps):
        coll_inst = pallas_collect(obj_f, obj_f, obj_obj_map, cf[4], heads_feat)   # INST2INST
        coll_sub = pallas_collect(obj_f, pred_f, subj_map, cf[0], heads_feat)      # REL2SUB
        coll_objr = pallas_collect(obj_f, pred_f, obj_map, cf[1], heads_feat)      # REL2OBJ
        avg = (coll_inst + coll_sub + coll_objr) * (1.0 / 3.0)
        new_obj = jnp.where(act_objr, obj_f + avg, obj_f)                          # UpdateUnit
        # Feature-level SUB2REL/OBJ2REL collects are dead in the reference
        # (source2rel_all is unused there) and are skipped.  The reference
        # predicate update adds the target to itself (upstream bug, reproduced):
        new_pred = jnp.where(act_s2r, pred_f + pred_f, pred_f)
        obj_f, pred_f = new_obj, new_pred

    # hidden embeddings: ReLU(True) then Linear
    obj_logits = pallas_prelu_linear(obj_f, params["obj_hidden"])
    pred_logits = pallas_prelu_linear(pred_f, params["rel_hidden"])

    # ---- score level agcn ----
    obj_s, pred_s = obj_logits, pred_logits
    cs = params["collect_score"]
    for _ in range(score_steps):
        coll_inst = pallas_collect(obj_s, obj_s, obj_obj_map, cs[4], heads_score)
        coll_sub = pallas_collect(obj_s, pred_s, subj_map, cs[0], heads_score)
        coll_objr = pallas_collect(obj_s, pred_s, obj_map, cs[1], heads_score)
        avg = (coll_inst + coll_sub + coll_objr) * (1.0 / 3.0)
        new_obj_s = jnp.where(act_objr, obj_s + avg, obj_s)

        coll_s2r = pallas_collect(pred_s, obj_s, subj_map_t, cs[2], heads_score)   # SUB2REL
        coll_o2r = pallas_collect(pred_s, obj_s, obj_map_t, cs[3], heads_score)    # OBJ2REL
        source2rel = (coll_s2r + coll_o2r) * 0.5
        new_pred_s = jnp.where(act_s2r, pred_s + source2rel, pred_s)

        obj_s, pred_s = new_obj_s, new_pred_s

    return obj_s, pred_s


# --------------------------------------------------------------------------
# _get_map_idxs equivalent (host-side glue; filter_the_mp_instance = False)
# Rows are padded to multiples of 8 (sublane alignment); padded rows/cols are
# all-zero so they never participate in attention or updates.
# --------------------------------------------------------------------------
def _round_up(n, m):
    return ((n + m - 1) // m) * m


def build_maps(num_proposals, rel_pair_idxs, row_pad=8):
    rel_inds = []
    offset = 0
    for prop_num, rp in zip(num_proposals, rel_pair_idxs):
        rel_inds.append(np.asarray(rp, np.int64) + offset)
        offset += prop_num
    rel_inds = np.concatenate(rel_inds, axis=0)
    n_obj = int(sum(num_proposals))
    n_rel = rel_inds.shape[0]
    n_obj_p = _round_up(n_obj, row_pad)
    n_rel_p = _round_up(n_rel, row_pad)
    subj = np.zeros((n_obj_p, n_rel_p), np.float32)
    objm = np.zeros((n_obj_p, n_rel_p), np.float32)
    subj[rel_inds[:, 0], np.arange(n_rel)] = 1.0
    objm[rel_inds[:, 1], np.arange(n_rel)] = 1.0
    oo = np.zeros((n_obj_p, n_obj_p), np.float32)
    oo[rel_inds[:, 0], rel_inds[:, 1]] = 1.0
    oo[rel_inds[:, 1], rel_inds[:, 0]] = 1.0
    return (rel_inds, jnp.asarray(subj), jnp.asarray(objm), jnp.asarray(oo),
            n_obj, n_rel, n_obj_p, n_rel_p)


def pad_rows(x, n_rows_padded):
    pad = n_rows_padded - x.shape[0]
    if pad == 0:
        return x
    return jnp.concatenate([x, jnp.zeros((pad, x.shape[1]), x.dtype)], axis=0)


# --------------------------------------------------------------------------
# Main
# --------------------------------------------------------------------------
if __name__ == "__main__":
    # small config
    in_channels = 64
    hidden_dim = 32
    num_classes_obj = 16
    num_classes_pred = 24
    heads_feat = 4        # GraphConvolutionCollectLayer default att_head_num
    heads_score = 1       # score-level layer uses att_head_num=1
    feat_update_step = 1
    score_update_step = 1

    key = jax.random.PRNGKey(0)
    k_params, k_inst, k_rel = jax.random.split(key, 3)
    kp = jax.random.split(k_params, 8)

    params = {
        "obj_emb": [init_linear(kp[0], in_channels, hidden_dim),
                    init_linear(kp[1], hidden_dim, hidden_dim)],
        "rel_emb": [init_linear(kp[2], in_channels, hidden_dim),
                    init_linear(kp[3], hidden_dim, hidden_dim)],
        "collect_feat": init_collect_layer(kp[4], hidden_dim, hidden_dim),
        "obj_hidden": init_linear(kp[5], hidden_dim, num_classes_obj),
        "rel_hidden": init_linear(kp[6], hidden_dim, num_classes_pred),
        "collect_score": init_collect_layer(kp[7], num_classes_obj, num_classes_pred),
    }

    # two "images", 3 proposals each, 4 relation pairs each
    num_proposals = [3, 3]
    rel_pair_idxs = [np.array([[0, 1], [1, 2], [2, 0], [0, 2]]),
                     np.array([[0, 1], [1, 0], [1, 2], [2, 1]])]

    (_, subj_map, obj_map, obj_obj_map,
     n_obj, n_rel, n_obj_p, n_rel_p) = build_maps(num_proposals, rel_pair_idxs)

    # inputs (stand-ins for pairwise_feature_extractor outputs), zero-padded rows
    inst_features = jax.random.normal(k_inst, (n_obj, in_channels), jnp.float32)
    rel_union_features = jax.random.normal(k_rel, (n_rel, in_channels), jnp.float32)
    inst_features_p = pad_rows(inst_features, n_obj_p)
    rel_union_features_p = pad_rows(rel_union_features, n_rel_p)

    forward = jax.jit(partial(grcnn_forward,
                              feat_steps=feat_update_step,
                              score_steps=score_update_step,
                              heads_feat=heads_feat,
                              heads_score=heads_score))

    obj_class_logits_p, pred_class_logits_p = forward(
        params, inst_features_p, rel_union_features_p,
        subj_map, obj_map, obj_obj_map)
    jax.block_until_ready((obj_class_logits_p, pred_class_logits_p))

    # strip row padding
    obj_class_logits = obj_class_logits_p[:n_obj]
    pred_class_logits = pred_class_logits_p[:n_rel]

    assert obj_class_logits.shape == (n_obj, num_classes_obj)
    assert pred_class_logits.shape == (n_rel, num_classes_pred)
    assert bool(jnp.all(jnp.isfinite(obj_class_logits)))
    assert bool(jnp.all(jnp.isfinite(pred_class_logits)))
    print("KERNEL_OK")
</pallas_src>

<mosaic_0001>
module attributes {stable_mosaic.version = 11 : i64} {
  func.func @_mlp2_kernel(%arg0: memref<8x64xf32, #tpu.memory_space<vmem>>, %arg1: memref<64x32xf32, #tpu.memory_space<vmem>>, %arg2: memref<1x32xf32, #tpu.memory_space<vmem>>, %arg3: memref<32x32xf32, #tpu.memory_space<vmem>>, %arg4: memref<1x32xf32, #tpu.memory_space<vmem>>, %arg5: memref<8x32xf32, #tpu.memory_space<vmem>>) attributes {dimension_semantics = [], scalar_prefetch = 0 : i64, scratch_operands = 0 : i64, tpu.core_type = #tpu.core_type<tc>} {
    %c0 = arith.constant 0 : index
    %c0_0 = arith.constant 0 : index
    %0 = vector.load %arg0[%c0, %c0_0] : memref<8x64xf32, #tpu.memory_space<vmem>>, vector<8x64xf32>
    %c0_1 = arith.constant 0 : index
    %c0_2 = arith.constant 0 : index
    %1 = vector.load %arg1[%c0_1, %c0_2] : memref<64x32xf32, #tpu.memory_space<vmem>>, vector<64x32xf32>
    %cst = arith.constant dense<0.000000e+00> : vector<8x32xf32>
    %2 = tpu.matmul %0, %1, %cst {dimension_numbers = #tpu.dot_dimension_numbers<[1], [0], [0], [1], [0, 0, 1, 1], [], []>} : vector<8x64xf32>, vector<64x32xf32>, vector<8x32xf32> -> vector<8x32xf32>
    %c0_3 = arith.constant 0 : index
    %c0_4 = arith.constant 0 : index
    %3 = vector.load %arg2[%c0_3, %c0_4] : memref<1x32xf32, #tpu.memory_space<vmem>>, vector<1x32xf32>
    %4 = vector.broadcast %3 : vector<1x32xf32> to vector<8x32xf32>
    %5 = arith.addf %2, %4 : vector<8x32xf32>
    %cst_5 = arith.constant 0.000000e+00 : f32
    %6 = vector.broadcast %cst_5 : f32 to vector<8x32xf32>
    %7 = arith.maximumf %5, %6 : vector<8x32xf32>
    %c0_6 = arith.constant 0 : index
    %c0_7 = arith.constant 0 : index
    %8 = vector.load %arg3[%c0_6, %c0_7] : memref<32x32xf32, #tpu.memory_space<vmem>>, vector<32x32xf32>
    %cst_8 = arith.constant dense<0.000000e+00> : vector<8x32xf32>
    %9 = tpu.matmul %7, %8, %cst_8 {dimension_numbers = #tpu.dot_dimension_numbers<[1], [0], [0], [1], [0, 0, 1, 1], [], []>} : vector<8x32xf32>, vector<32x32xf32>, vector<8x32xf32> -> vector<8x32xf32>
    %c0_9 = arith.constant 0 : index
    %c0_10 = arith.constant 0 : index
    %10 = vector.load %arg4[%c0_9, %c0_10] : memref<1x32xf32, #tpu.memory_space<vmem>>, vector<1x32xf32>
    %11 = vector.broadcast %10 : vector<1x32xf32> to vector<8x32xf32>
    %12 = arith.addf %9, %11 : vector<8x32xf32>
    %c0_11 = arith.constant 0 : index
    %c0_12 = arith.constant 0 : index
    %13 = vector.load %arg5[%c0_11, %c0_12] : memref<8x32xf32, #tpu.memory_space<vmem>>, vector<8x32xf32>
    tpu.vector_store %arg5[%c0_11, %c0_12], %12 {strides = array<i32>} : memref<8x32xf32, #tpu.memory_space<vmem>>, vector<8x32xf32>,
    return
  }
}

module attributes {stable_mosaic.version = 11 : i64} {
  func.func @_collect_kernel(%arg0: memref<8x32xf32, #tpu.memory_space<vmem>>, %arg1: memref<8x32xf32, #tpu.memory_space<vmem>>, %arg2: memref<8x8xf32, #tpu.memory_space<vmem>>, %arg3: memref<32x32xf32, #tpu.memory_space<vmem>>, %arg4: memref<1x32xf32, #tpu.memory_space<vmem>>, %arg5: memref<32x32xf32, #tpu.memory_space<vmem>>, %arg6: memref<1x32xf32, #tpu.memory_space<vmem>>, %arg7: memref<32x64xf32, #tpu.memory_space<vmem>>, %arg8: memref<1x64xf32, #tpu.memory_space<vmem>>, %arg9: memref<32x32xf32, #tpu.memory_space<vmem>>, %arg10: memref<1x32xf32, #tpu.memory_space<vmem>>, %arg11: memref<8x32xf32, #tpu.memory_space<vmem>>) attributes {dimension_semantics = [], scalar_prefetch = 0 : i64, scratch_operands = 0 : i64, tpu.core_type = #tpu.core_type<tc>} {
    %c0 = arith.constant 0 : index
    %c0_0 = arith.constant 0 : index
    %0 = vector.load %arg2[%c0, %c0_0] : memref<8x8xf32, #tpu.memory_space<vmem>>, vector<8x8xf32>
    %cst = arith.constant 0.000000e+00 : f32
    %1 = vector.broadcast %cst : f32 to vector<8x8xf32>
    %2 = arith.cmpf ogt, %0, %1 : vector<8x8xf32>
    %cst_1 = arith.constant dense<0.000000e+00> : vector<8xf32>
    %3 = vector.multi_reduction <add>, %0, %cst_1 [1] : vector<8x8xf32> to vector<8xf32>
    %4 = vector.shape_cast %3 : vector<8xf32> to vector<8x1xf32>
    %cst_2 = arith.constant 0.000000e+00 : f32
    %5 = vector.broadcast %cst_2 : f32 to vector<8x1xf32>
    %6 = arith.cmpf ogt, %4, %5 : vector<8x1xf32>
    %c0_3 = arith.constant 0 : index
    %c0_4 = arith.constant 0 : index
    %7 = vector.load %arg1[%c0_3, %c0_4] : memref<8x32xf32, #tpu.memory_space<vmem>>, vector<8x32xf32>
    %c0_5 = arith.constant 0 : index
    %c0_6 = arith.constant 0 : index
    %8 = vector.load %arg3[%c0_5, %c0_6] : memref<32x32xf32, #tpu.memory_space<vmem>>, vector<32x32xf32>
    %cst_7 = arith.constant dense<0.000000e+00> : vector<8x32xf32>
    %9 = tpu.matmul %7, %8, %cst_7 {dimension_numbers = #tpu.dot_dimension_numbers<[1], [0], [0], [1], [0, 0, 1, 1], [], []>} : vector<8x32xf32>, vector<32x32xf32>, vector<8x32xf32> -> vector<8x32xf32>
    %c0_8 = arith.constant 0 : index
    %c0_9 = arith.constant 0 : index
    %10 = vector.load %arg4[%c0_8, %c0_9] : memref<1x32xf32, #tpu.memory_space<vmem>>, vector<1x32xf32>
    %11 = vector.broadcast %10 : vector<1x32xf32> to vector<8x32xf32>
    %12 = arith.addf %9, %11 : vector<8x32xf32>
    %cst_10 = arith.constant 0.000000e+00 : f32
    %13 = vector.broadcast %cst_10 : f32 to vector<8x32xf32>
    %14 = arith.maximumf %12, %13 : vector<8x32xf32>
    %c0_11 = arith.constant 0 : index
    %c0_12 = arith.constant 0 : index
    %15 = vector.load %arg0[%c0_11, %c0_12] : memref<8x32xf32, #tpu.memory_space<vmem>>, vector<8x32xf32>
    %c0_13 = arith.constant 0 : index
    %c0_14 = arith.constant 0 : index
    %16 = vector.load %arg5[%c0_13, %c0_14] : memref<32x32xf32, #tpu.memory_space<vmem>>, vector<32x32xf32>
    %cst_15 = arith.constant dense<0.000000e+00> : vector<8x32xf32>
    %17 = tpu.matmul %15, %16, %cst_15 {dimension_numbers = #tpu.dot_dimension_numbers<[1], [0], [0], [1], [0, 0, 1, 1], [], []>} : vector<8x32xf32>, vector<32x32xf32>, vector<8x32xf32> -> vector<8x32xf32>
    %c0_16 = arith.constant 0 : index
    %c0_17 = arith.constant 0 : index
    %18 = vector.load %arg6[%c0_16, %c0_17] : memref<1x32xf32, #tpu.memory_space<vmem>>, vector<1x32xf32>
    %19 = vector.broadcast %18 : vector<1x32xf32> to vector<8x32xf32>
    %20 = arith.addf %17, %19 : vector<8x32xf32>
    %cst_18 = arith.constant 0.353553385 : f32
    %21 = vector.broadcast %cst_18 : f32 to vector<8x32xf32>
    %22 = arith.mulf %20, %21 : vector<8x32xf32>
    %c0_19 = arith.constant 0 : index
    %c0_20 = arith.constant 0 : index
    %23 = vector.load %arg7[%c0_19, %c0_20] : memref<32x64xf32, #tpu.memory_space<vmem>>, vector<32x64xf32>
    %cst_21 = arith.constant dense<0.000000e+00> : vector<8x64xf32>
    %24 = tpu.matmul %14, %23, %cst_21 {dimension_numbers = #tpu.dot_dimension_numbers<[1], [0], [0], [1], [0, 0, 1, 1], [], []>} : vector<8x32xf32>, vector<32x64xf32>, vector<8x64xf32> -> vector<8x64xf32>
    %c0_22 = arith.constant 0 : index
    %c0_23 = arith.constant 0 : index
    %25 = vector.load %arg8[%c0_22, %c0_23] : memref<1x64xf32, #tpu.memory_space<vmem>>, vector<1x64xf32>
    %26 = vector.broadcast %25 : vector<1x64xf32> to vector<8x64xf32>
    %27 = arith.addf %24, %26 : vector<8x64xf32>
    %28 = vector.extract_strided_slice %27 {offsets = [0, 0], sizes = [8, 32], strides = [1, 1]} : vector<8x64xf32> to vector<8x32xf32>
    %29 = vector.extract_strided_slice %27 {offsets = [0, 32], sizes = [8, 32], strides = [1, 1]} : vector<8x64xf32> to vector<8x32xf32>
    %30 = vector.extract_strided_slice %22 {offsets = [0, 0], sizes = [8, 8], strides = [1, 1]} : vector<8x32xf32> to vector<8x8xf32>
    %31 = vector.extract_strided_slice %28 {offsets = [0, 0], sizes = [8, 8], strides = [1, 1]} : vector<8x32xf32> to vector<8x8xf32>
    %32 = tpu.transpose %31, [1, 0] : vector<8x8xf32> -> vector<8x8xf32>
    %cst_24 = arith.constant dense<0.000000e+00> : vector<8x8xf32>
    %33 = tpu.matmul %30, %32, %cst_24 {dimension_numbers = #tpu.dot_dimension_numbers<[1], [0], [0], [1], [0, 0, 1, 1], [], []>} : vector<8x8xf32>, vector<8x8xf32>, vector<8x8xf32> -> vector<8x8xf32>
    %cst_25 = arith.constant -1.000000e+30 : f32
    %34 = vector.broadcast %cst_25 : f32 to vector<8x8xf32>
    %35 = arith.select %2, %33, %34 : vector<8x8xi1>, vector<8x8xf32>
    %cst_26 = arith.constant dense<0xFF800000> : vector<8xf32>
    %36 = vector.multi_reduction <maximumf>, %35, %cst_26 [1] : vector<8x8xf32> to vector<8xf32>
    %37 = vector.shape_cast %36 : vector<8xf32> to vector<8x1xf32>
    %38 = vector.broadcast %37 : vector<8x1xf32> to vector<8x8xf32>
    %39 = arith.subf %35, %38 : vector<8x8xf32>
    %40 = math.exp %39 : vector<8x8xf32>
    %cst_27 = arith.constant dense<0.000000e+00> : vector<8xf32>
    %41 = vector.multi_reduction <add>, %40, %cst_27 [1] : vector<8x8xf32> to vector<8xf32>
    %42 = vector.shape_cast %41 : vector<8xf32> to vector<8x1xf32>
    %43 = tpu.reciprocal %42 {approx = true} : vector<8x1xf32> -> vector<8x1xf32>
    %44 = vector.broadcast %43 : vector<8x1xf32> to vector<8x8xf32>
    %45 = arith.mulf %40, %44 : vector<8x8xf32>
    %46 = vector.extract_strided_slice %29 {offsets = [0, 0], sizes = [8, 8], strides = [1, 1]} : vector<8x32xf32> to vector<8x8xf32>
    %cst_28 = arith.constant dense<0.000000e+00> : vector<8x8xf32>
    %47 = tpu.matmul %45, %46, %cst_28 {dimension_numbers = #tpu.dot_dimension_numbers<[1], [0], [0], [1], [0, 0, 1, 1], [], []>} : vector<8x8xf32>, vector<8x8xf32>, vector<8x8xf32> -> vector<8x8xf32>
    %48 = vector.extract_strided_slice %22 {offsets = [0, 8], sizes = [8, 8], strides = [1, 1]} : vector<8x32xf32> to vector<8x8xf32>
    %49 = vector.extract_strided_slice %28 {offsets = [0, 8], sizes = [8, 8], strides = [1, 1]} : vector<8x32xf32> to vector<8x8xf32>
    %50 = tpu.transpose %49, [1, 0] : vector<8x8xf32> -> vector<8x8xf32>
    %cst_29 = arith.constant dense<0.000000e+00> : vector<8x8xf32>
    %51 = tpu.matmul %48, %50, %cst_29 {dimension_numbers = #tpu.dot_dimension_numbers<[1], [0], [0], [1], [0, 0, 1, 1], [], []>} : vector<8x8xf32>, vector<8x8xf32>, vector<8x8xf32> -> vector<8x8xf32>
    %cst_30 = arith.constant -1.000000e+30 : f32
    %52 = vector.broadcast %cst_30 : f32 to vector<8x8xf32>
    %53 = arith.select %2, %51, %52 : vector<8x8xi1>, vector<8x8xf32>
    %cst_31 = arith.constant dense<0xFF800000> : vector<8xf32>
    %54 = vector.multi_reduction <maximumf>, %53, %cst_31 [1] : vector<8x8xf32> to vector<8xf32>
    %55 = vector.shape_cast %54 : vector<8xf32> to vector<8x1xf32>
    %56 = vector.broadcast %55 : vector<8x1xf32> to vector<8x8xf32>
    %57 = arith.subf %53, %56 : vector<8x8xf32>
    %58 = math.exp %57 : vector<8x8xf32>
    %cst_32 = arith.constant dense<0.000000e+00> : vector<8xf32>
    %59 = vector.multi_reduction <add>, %58, %cst_32 [1] : vector<8x8xf32> to vector<8xf32>
    %60 = vector.shape_cast %59 : vector<8xf32> to vector<8x1xf32>
    %61 = tpu.reciprocal %60 {approx = true} : vector<8x1xf32> -> vector<8x1xf32>
    %62 = vector.broadcast %61 : vector<8x1xf32> to vector<8x8xf32>
    %63 = arith.mulf %58, %62 : vector<8x8xf32>
    %64 = vector.extract_strided_slice %29 {offsets = [0, 8], sizes = [8, 8], strides = [1, 1]} : vector<8x32xf32> to vector<8x8xf32>
    %cst_33 = arith.constant dense<0.000000e+00> : vector<8x8xf32>
    %65 = tpu.matmul %63, %64, %cst_33 {dimension_numbers = #tpu.dot_dimension_numbers<[1], [0], [0], [1], [0, 0, 1, 1], [], []>} : vector<8x8xf32>, vector<8x8xf32>, vector<8x8xf32> -> vector<8x8xf32>
    %66 = vector.extract_strided_slice %22 {offsets = [0, 16], sizes = [8, 8], strides = [1, 1]} : vector<8x32xf32> to vector<8x8xf32>
    %67 = vector.extract_strided_slice %28 {offsets = [0, 16], sizes = [8, 8], strides = [1, 1]} : vector<8x32xf32> to vector<8x8xf32>
    %68 = tpu.transpose %67, [1, 0] : vector<8x8xf32> -> vector<8x8xf32>
    %cst_34 = arith.constant dense<0.000000e+00> : vector<8x8xf32>
    %69 = tpu.matmul %66, %68, %cst_34 {dimension_numbers = #tpu.dot_dimension_numbers<[1], [0], [0], [1], [0, 0, 1, 1], [], []>} : vector<8x8xf32>, vector<8x8xf32>, vector<8x8xf32> -> vector<8x8xf32>
    %cst_35 = arith.constant -1.000000e+30 : f32
    %70 = vector.broadcast %cst_35 : f32 to vector<8x8xf32>
    %71 = arith.select %2, %69, %70 : vector<8x8xi1>, vector<8x8xf32>
    %cst_36 = arith.constant dense<0xFF800000> : vector<8xf32>
    %72 = vector.multi_reduction <maximumf>, %71, %cst_36 [1] : vector<8x8xf32> to vector<8xf32>
    %73 = vector.shape_cast %72 : vector<8xf32> to vector<8x1xf32>
    %74 = vector.broadcast %73 : vector<8x1xf32> to vector<8x8xf32>
    %75 = arith.subf %71, %74 : vector<8x8xf32>
    %76 = math.exp %75 : vector<8x8xf32>
    %cst_37 = arith.constant dense<0.000000e+00> : vector<8xf32>
    %77 = vector.multi_reduction <add>, %76, %cst_37 [1] : vector<8x8xf32> to vector<8xf32>
    %78 = vector.shape_cast %77 : vector<8xf32> to vector<8x1xf32>
    %79 = tpu.reciprocal %78 {approx = true} : vector<8x1xf32> -> vector<8x1xf32>
    %80 = vector.broadcast %79 : vector<8x1xf32> to vector<8x8xf32>
    %81 = arith.mulf %76, %80 : vector<8x8xf32>
    %82 = vector.extract_strided_slice %29 {offsets = [0, 16], sizes = [8, 8], strides = [1, 1]} : vector<8x32xf32> to vector<8x8xf32>
    %cst_38 = arith.constant dense<0.000000e+00> : vector<8x8xf32>
    %83 = tpu.matmul %81, %82, %cst_38 {dimension_numbers = #tpu.dot_dimension_numbers<[1], [0], [0], [1], [0, 0, 1, 1], [], []>} : vector<8x8xf32>, vector<8x8xf32>, vector<8x8xf32> -> vector<8x8xf32>
    %84 = vector.extract_strided_slice %22 {offsets = [0, 24], sizes = [8, 8], strides = [1, 1]} : vector<8x32xf32> to vector<8x8xf32>
    %85 = vector.extract_strided_slice %28 {offsets = [0, 24], sizes = [8, 8], strides = [1, 1]} : vector<8x32xf32> to vector<8x8xf32>
    %86 = tpu.transpose %85, [1, 0] : vector<8x8xf32> -> vector<8x8xf32>
    %cst_39 = arith.constant dense<0.000000e+00> : vector<8x8xf32>
    %87 = tpu.matmul %84, %86, %cst_39 {dimension_numbers = #tpu.dot_dimension_numbers<[1], [0], [0], [1], [0, 0, 1, 1], [], []>} : vector<8x8xf32>, vector<8x8xf32>, vector<8x8xf32> -> vector<8x8xf32>
    %cst_40 = arith.constant -1.000000e+30 : f32
    %88 = vector.broadcast %cst_40 : f32 to vector<8x8xf32>
    %89 = arith.select %2, %87, %88 : vector<8x8xi1>, vector<8x8xf32>
    %cst_41 = arith.constant dense<0xFF800000> : vector<8xf32>
    %90 = vector.multi_reduction <maximumf>, %89, %cst_41 [1] : vector<8x8xf32> to vector<8xf32>
    %91 = vector.shape_cast %90 : vector<8xf32> to vector<8x1xf32>
    %92 = vector.broadcast %91 : vector<8x1xf32> to vector<8x8xf32>
    %93 = arith.subf %89, %92 : vector<8x8xf32>
    %94 = math.exp %93 : vector<8x8xf32>
    %cst_42 = arith.constant dense<0.000000e+00> : vector<8xf32>
    %95 = vector.multi_reduction <add>, %94, %cst_42 [1] : vector<8x8xf32> to vector<8xf32>
    %96 = vector.shape_cast %95 : vector<8xf32> to vector<8x1xf32>
    %97 = tpu.reciprocal %96 {approx = true} : vector<8x1xf32> -> vector<8x1xf32>
    %98 = vector.broadcast %97 : vector<8x1xf32> to vector<8x8xf32>
    %99 = arith.mulf %94, %98 : vector<8x8xf32>
    %100 = vector.extract_strided_slice %29 {offsets = [0, 24], sizes = [8, 8], strides = [1, 1]} : vector<8x32xf32> to vector<8x8xf32>
    %cst_43 = arith.constant dense<0.000000e+00> : vector<8x8xf32>
    %101 = tpu.matmul %99, %100, %cst_43 {dimension_numbers = #tpu.dot_dimension_numbers<[1], [0], [0], [1], [0, 0, 1, 1], [], []>} : vector<8x8xf32>, vector<8x8xf32>, vector<8x8xf32> -> vector<8x8xf32>
    %102 = tpu.concatenate %47, %65, %83, %101 in 1 : vector<8x8xf32>, vector<8x8xf32>, vector<8x8xf32>, vector<8x8xf32> -> vector<8x32xf32>
    %c0_44 = arith.constant 0 : index
    %c0_45 = arith.constant 0 : index
    %103 = vector.load %arg9[%c0_44, %c0_45] : memref<32x32xf32, #tpu.memory_space<vmem>>, vector<32x32xf32>
    %cst_46 = arith.constant dense<0.000000e+00> : vector<8x32xf32>
    %104 = tpu.matmul %102, %103, %cst_46 {dimension_numbers = #tpu.dot_dimension_numbers<[1], [0], [0], [1], [0, 0, 1, 1], [], []>} : vector<8x32xf32>, vector<32x32xf32>, vector<8x32xf32> -> vector<8x32xf32>
    %c0_47 = arith.constant 0 : index
    %c0_48 = arith.constant 0 : index
    %105 = vector.load %arg10[%c0_47, %c0_48] : memref<1x32xf32, #tpu.memory_space<vmem>>, vector<1x32xf32>
    %106 = vector.broadcast %105 : vector<1x32xf32> to vector<8x32xf32>
    %107 = arith.addf %104, %106 : vector<8x32xf32>
    %cst_49 = arith.constant 0.000000e+00 : f32
    %108 = vector.shape_cast %6 : vector<8x1xi1> to vector<8x1xi1>
    %109 = vector.broadcast %108 : vector<8x1xi1> to vector<8x32xi1>
    %110 = vector.broadcast %cst_49 : f32 to vector<8x32xf32>
    %111 = arith.select %109, %107, %110 : vector<8x32xi1>, vector<8x32xf32>
    %c0_50 = arith.constant 0 : index
    %c0_51 = arith.constant 0 : index
    %112 = vector.load %arg11[%c0_50, %c0_51] : memref<8x32xf32, #tpu.memory_space<vmem>>, vector<8x32xf32>
    tpu.vector_store %arg11[%c0_50, %c0_51], %111 {strides = array<i32>} : memref<8x32xf32, #tpu.memory_space<vmem>>, vector<8x32xf32>,
    return
  }
}

module attributes {stable_mosaic.version = 11 : i64} {
  func.func @_prelu_linear_kernel(%arg0: memref<8x32xf32, #tpu.memory_space<vmem>>, %arg1: memref<32x16xf32, #tpu.memory_space<vmem>>, %arg2: memref<1x16xf32, #tpu.memory_space<vmem>>, %arg3: memref<8x16xf32, #tpu.memory_space<vmem>>) attributes {dimension_semantics = [], scalar_prefetch = 0 : i64, scratch_operands = 0 : i64, tpu.core_type = #tpu.core_type<tc>} {
    %c0 = arith.constant 0 : index
    %c0_0 = arith.constant 0 : index
    %0 = vector.load %arg0[%c0, %c0_0] : memref<8x32xf32, #tpu.memory_space<vmem>>, vector<8x32xf32>
    %cst = arith.constant 0.000000e+00 : f32
    %1 = vector.broadcast %cst : f32 to vector<8x32xf32>
    %2 = arith.maximumf %0, %1 : vector<8x32xf32>
    %c0_1 = arith.constant 0 : index
    %c0_2 = arith.constant 0 : index
    %3 = vector.load %arg1[%c0_1, %c0_2] : memref<32x16xf32, #tpu.memory_space<vmem>>, vector<32x16xf32>
    %cst_3 = arith.constant dense<0.000000e+00> : vector<8x16xf32>
    %4 = tpu.matmul %2, %3, %cst_3 {dimension_numbers = #tpu.dot_dimension_numbers<[1], [0], [0], [1], [0, 0, 1, 1], [], []>} : vector<8x32xf32>, vector<32x16xf32>, vector<8x16xf32> -> vector<8x16xf32>
    %c0_4 = arith.constant 0 : index
    %c0_5 = arith.constant 0 : index
    %5 = vector.load %arg2[%c0_4, %c0_5] : memref<1x16xf32, #tpu.memory_space<vmem>>, vector<1x16xf32>
    %6 = vector.broadcast %5 : vector<1x16xf32> to vector<8x16xf32>
    %7 = arith.addf %4, %6 : vector<8x16xf32>
    %c0_6 = arith.constant 0 : index
    %c0_7 = arith.constant 0 : index
    %8 = vector.load %arg3[%c0_6, %c0_7] : memref<8x16xf32, #tpu.memory_space<vmem>>, vector<8x16xf32>
    tpu.vector_store %arg3[%c0_6, %c0_7], %7 {strides = array<i32>} : memref<8x16xf32, #tpu.memory_space<vmem>>, vector<8x16xf32>,
    return
  }
}

module attributes {stable_mosaic.version = 11 : i64} {
  func.func @_prelu_linear_kernel(%arg0: memref<8x32xf32, #tpu.memory_space<vmem>>, %arg1: memref<32x24xf32, #tpu.memory_space<vmem>>, %arg2: memref<1x24xf32, #tpu.memory_space<vmem>>, %arg3: memref<8x24xf32, #tpu.memory_space<vmem>>) attributes {dimension_semantics = [], scalar_prefetch = 0 : i64, scratch_operands = 0 : i64, tpu.core_type = #tpu.core_type<tc>} {
    %c0 = arith.constant 0 : index
    %c0_0 = arith.constant 0 : index
    %0 = vector.load %arg0[%c0, %c0_0] : memref<8x32xf32, #tpu.memory_space<vmem>>, vector<8x32xf32>
    %cst = arith.constant 0.000000e+00 : f32
    %1 = vector.broadcast %cst : f32 to vector<8x32xf32>
    %2 = arith.maximumf %0, %1 : vector<8x32xf32>
    %c0_1 = arith.constant 0 : index
    %c0_2 = arith.constant 0 : index
    %3 = vector.load %arg1[%c0_1, %c0_2] : memref<32x24xf32, #tpu.memory_space<vmem>>, vector<32x24xf32>
    %cst_3 = arith.constant dense<0.000000e+00> : vector<8x24xf32>
    %4 = tpu.matmul %2, %3, %cst_3 {dimension_numbers = #tpu.dot_dimension_numbers<[1], [0], [0], [1], [0, 0, 1, 1], [], []>} : vector<8x32xf32>, vector<32x24xf32>, vector<8x24xf32> -> vector<8x24xf32>
    %c0_4 = arith.constant 0 : index
    %c0_5 = arith.constant 0 : index
    %5 = vector.load %arg2[%c0_4, %c0_5] : memref<1x24xf32, #tpu.memory_space<vmem>>, vector<1x24xf32>
    %6 = vector.broadcast %5 : vector<1x24xf32> to vector<8x24xf32>
    %7 = arith.addf %4, %6 : vector<8x24xf32>
    %c0_6 = arith.constant 0 : index
    %c0_7 = arith.constant 0 : index
    %8 = vector.load %arg3[%c0_6, %c0_7] : memref<8x24xf32, #tpu.memory_space<vmem>>, vector<8x24xf32>
    tpu.vector_store %arg3[%c0_6, %c0_7], %7 {strides = array<i32>} : memref<8x24xf32, #tpu.memory_space<vmem>>, vector<8x24xf32>,
    return
  }
}

module attributes {stable_mosaic.version = 11 : i64} {
  func.func @_collect_kernel(%arg0: memref<8x16xf32, #tpu.memory_space<vmem>>, %arg1: memref<8x24xf32, #tpu.memory_space<vmem>>, %arg2: memref<8x8xf32, #tpu.memory_space<vmem>>, %arg3: memref<24x16xf32, #tpu.memory_space<vmem>>, %arg4: memref<1x16xf32, #tpu.memory_space<vmem>>, %arg5: memref<16x16xf32, #tpu.memory_space<vmem>>, %arg6: memref<1x16xf32, #tpu.memory_space<vmem>>, %arg7: memref<16x32xf32, #tpu.memory_space<vmem>>, %arg8: memref<1x32xf32, #tpu.memory_space<vmem>>, %arg9: memref<16x16xf32, #tpu.memory_space<vmem>>, %arg10: memref<1x16xf32, #tpu.memory_space<vmem>>, %arg11: memref<8x16xf32, #tpu.memory_space<vmem>>) attributes {dimension_semantics = [], scalar_prefetch = 0 : i64, scratch_operands = 0 : i64, tpu.core_type = #tpu.core_type<tc>} {
    %c0 = arith.constant 0 : index
    %c0_0 = arith.constant 0 : index
    %0 = vector.load %arg2[%c0, %c0_0] : memref<8x8xf32, #tpu.memory_space<vmem>>, vector<8x8xf32>
    %cst = arith.constant 0.000000e+00 : f32
    %1 = vector.broadcast %cst : f32 to vector<8x8xf32>
    %2 = arith.cmpf ogt, %0, %1 : vector<8x8xf32>
    %cst_1 = arith.constant dense<0.000000e+00> : vector<8xf32>
    %3 = vector.multi_reduction <add>, %0, %cst_1 [1] : vector<8x8xf32> to vector<8xf32>
    %4 = vector.shape_cast %3 : vector<8xf32> to vector<8x1xf32>
    %cst_2 = arith.constant 0.000000e+00 : f32
    %5 = vector.broadcast %cst_2 : f32 to vector<8x1xf32>
    %6 = arith.cmpf ogt, %4, %5 : vector<8x1xf32>
    %c0_3 = arith.constant 0 : index
    %c0_4 = arith.constant 0 : index
    %7 = vector.load %arg1[%c0_3, %c0_4] : memref<8x24xf32, #tpu.memory_space<vmem>>, vector<8x24xf32>
    %c0_5 = arith.constant 0 : index
    %c0_6 = arith.constant 0 : index
    %8 = vector.load %arg3[%c0_5, %c0_6] : memref<24x16xf32, #tpu.memory_space<vmem>>, vector<24x16xf32>
    %cst_7 = arith.constant dense<0.000000e+00> : vector<8x16xf32>
    %9 = tpu.matmul %7, %8, %cst_7 {dimension_numbers = #tpu.dot_dimension_numbers<[1], [0], [0], [1], [0, 0, 1, 1], [], []>} : vector<8x24xf32>, vector<24x16xf32>, vector<8x16xf32> -> vector<8x16xf32>
    %c0_8 = arith.constant 0 : index
    %c0_9 = arith.constant 0 : index
    %10 = vector.load %arg4[%c0_8, %c0_9] : memref<1x16xf32, #tpu.memory_space<vmem>>, vector<1x16xf32>
    %11 = vector.broadcast %10 : vector<1x16xf32> to vector<8x16xf32>
    %12 = arith.addf %9, %11 : vector<8x16xf32>
    %cst_10 = arith.constant 0.000000e+00 : f32
    %13 = vector.broadcast %cst_10 : f32 to vector<8x16xf32>
    %14 = arith.maximumf %12, %13 : vector<8x16xf32>
    %c0_11 = arith.constant 0 : index
    %c0_12 = arith.constant 0 : index
    %15 = vector.load %arg0[%c0_11, %c0_12] : memref<8x16xf32, #tpu.memory_space<vmem>>, vector<8x16xf32>
    %c0_13 = arith.constant 0 : index
    %c0_14 = arith.constant 0 : index
    %16 = vector.load %arg5[%c0_13, %c0_14] : memref<16x16xf32, #tpu.memory_space<vmem>>, vector<16x16xf32>
    %cst_15 = arith.constant dense<0.000000e+00> : vector<8x16xf32>
    %17 = tpu.matmul %15, %16, %cst_15 {dimension_numbers = #tpu.dot_dimension_numbers<[1], [0], [0], [1], [0, 0, 1, 1], [], []>} : vector<8x16xf32>, vector<16x16xf32>, vector<8x16xf32> -> vector<8x16xf32>
    %c0_16 = arith.constant 0 : index
    %c0_17 = arith.constant 0 : index
    %18 = vector.load %arg6[%c0_16, %c0_17] : memref<1x16xf32, #tpu.memory_space<vmem>>, vector<1x16xf32>
    %19 = vector.broadcast %18 : vector<1x16xf32> to vector<8x16xf32>
    %20 = arith.addf %17, %19 : vector<8x16xf32>
    %cst_18 = arith.constant 2.500000e-01 : f32
    %21 = vector.broadcast %cst_18 : f32 to vector<8x16xf32>
    %22 = arith.mulf %20, %21 : vector<8x16xf32>
    %c0_19 = arith.constant 0 : index
    %c0_20 = arith.constant 0 : index
    %23 = vector.load %arg7[%c0_19, %c0_20] : memref<16x32xf32, #tpu.memory_space<vmem>>, vector<16x32xf32>
    %cst_21 = arith.constant dense<0.000000e+00> : vector<8x32xf32>
    %24 = tpu.matmul %14, %23, %cst_21 {dimension_numbers = #tpu.dot_dimension_numbers<[1], [0], [0], [1], [0, 0, 1, 1], [], []>} : vector<8x16xf32>, vector<16x32xf32>, vector<8x32xf32> -> vector<8x32xf32>
    %c0_22 = arith.constant 0 : index
    %c0_23 = arith.constant 0 : index
    %25 = vector.load %arg8[%c0_22, %c0_23] : memref<1x32xf32, #tpu.memory_space<vmem>>, vector<1x32xf32>
    %26 = vector.broadcast %25 : vector<1x32xf32> to vector<8x32xf32>
    %27 = arith.addf %24, %26 : vector<8x32xf32>
    %28 = vector.extract_strided_slice %27 {offsets = [0, 0], sizes = [8, 16], strides = [1, 1]} : vector<8x32xf32> to vector<8x16xf32>
    %29 = vector.extract_strided_slice %27 {offsets = [0, 16], sizes = [8, 16], strides = [1, 1]} : vector<8x32xf32> to vector<8x16xf32>
    %30 = tpu.transpose %28, [1, 0] : vector<8x16xf32> -> vector<16x8xf32>
    %cst_24 = arith.constant dense<0.000000e+00> : vector<8x8xf32>
    %31 = tpu.matmul %22, %30, %cst_24 {dimension_numbers = #tpu.dot_dimension_numbers<[1], [0], [0], [1], [0, 0, 1, 1], [], []>} : vector<8x16xf32>, vector<16x8xf32>, vector<8x8xf32> -> vector<8x8xf32>
    %cst_25 = arith.constant -1.000000e+30 : f32
    %32 = vector.broadcast %cst_25 : f32 to vector<8x8xf32>
    %33 = arith.select %2, %31, %32 : vector<8x8xi1>, vector<8x8xf32>
    %cst_26 = arith.constant dense<0xFF800000> : vector<8xf32>
    %34 = vector.multi_reduction <maximumf>, %33, %cst_26 [1] : vector<8x8xf32> to vector<8xf32>
    %35 = vector.shape_cast %34 : vector<8xf32> to vector<8x1xf32>
    %36 = vector.broadcast %35 : vector<8x1xf32> to vector<8x8xf32>
    %37 = arith.subf %33, %36 : vector<8x8xf32>
    %38 = math.exp %37 : vector<8x8xf32>
    %cst_27 = arith.constant dense<0.000000e+00> : vector<8xf32>
    %39 = vector.multi_reduction <add>, %38, %cst_27 [1] : vector<8x8xf32> to vector<8xf32>
    %40 = vector.shape_cast %39 : vector<8xf32> to vector<8x1xf32>
    %41 = tpu.reciprocal %40 {approx = true} : vector<8x1xf32> -> vector<8x1xf32>
    %42 = vector.broadcast %41 : vector<8x1xf32> to vector<8x8xf32>
    %43 = arith.mulf %38, %42 : vector<8x8xf32>
    %cst_28 = arith.constant dense<0.000000e+00> : vector<8x16xf32>
    %44 = tpu.matmul %43, %29, %cst_28 {dimension_numbers = #tpu.dot_dimension_numbers<[1], [0], [0], [1], [0, 0, 1, 1], [], []>} : vector<8x8xf32>, vector<8x16xf32>, vector<8x16xf32> -> vector<8x16xf32>
    %c0_29 = arith.constant 0 : index
    %c0_30 = arith.constant 0 : index
    %45 = vector.load %arg9[%c0_29, %c0_30] : memref<16x16xf32, #tpu.memory_space<vmem>>, vector<16x16xf32>
    %cst_31 = arith.constant dense<0.000000e+00> : vector<8x16xf32>
    %46 = tpu.matmul %44, %45, %cst_31 {dimension_numbers = #tpu.dot_dimension_numbers<[1], [0], [0], [1], [0, 0, 1, 1], [], []>} : vector<8x16xf32>, vector<16x16xf32>, vector<8x16xf32> -> vector<8x16xf32>
    %c0_32 = arith.constant 0 : index
    %c0_33 = arith.constant 0 : index
    %47 = vector.load %arg10[%c0_32, %c0_33] : memref<1x16xf32, #tpu.memory_space<vmem>>, vector<1x16xf32>
    %48 = vector.broadcast %47 : vector<1x16xf32> to vector<8x16xf32>
    %49 = arith.addf %46, %48 : vector<8x16xf32>
    %cst_34 = arith.constant 0.000000e+00 : f32
    %50 = vector.shape_cast %6 : vector<8x1xi1> to vector<8x1xi1>
    %51 = vector.broadcast %50 : vector<8x1xi1> to vector<8x16xi1>
    %52 = vector.broadcast %cst_34 : f32 to vector<8x16xf32>
    %53 = arith.select %51, %49, %52 : vector<8x16xi1>, vector<8x16xf32>
    %c0_35 = arith.constant 0 : index
    %c0_36 = arith.constant 0 : index
    %54 = vector.load %arg11[%c0_35, %c0_36] : memref<8x16xf32, #tpu.memory_space<vmem>>, vector<8x16xf32>
    tpu.vector_store %arg11[%c0_35, %c0_36], %53 {strides = array<i32>} : memref<8x16xf32, #tpu.memory_space<vmem>>, vector<8x16xf32>,
    return
  }
}

module attributes {stable_mosaic.version = 11 : i64} {
  func.func @_collect_kernel(%arg0: memref<8x24xf32, #tpu.memory_space<vmem>>, %arg1: memref<8x16xf32, #tpu.memory_space<vmem>>, %arg2: memref<8x8xf32, #tpu.memory_space<vmem>>, %arg3: memref<16x24xf32, #tpu.memory_space<vmem>>, %arg4: memref<1x24xf32, #tpu.memory_space<vmem>>, %arg5: memref<24x24xf32, #tpu.memory_space<vmem>>, %arg6: memref<1x24xf32, #tpu.memory_space<vmem>>, %arg7: memref<24x48xf32, #tpu.memory_space<vmem>>, %arg8: memref<1x48xf32, #tpu.memory_space<vmem>>, %arg9: memref<24x24xf32, #tpu.memory_space<vmem>>, %arg10: memref<1x24xf32, #tpu.memory_space<vmem>>, %arg11: memref<8x24xf32, #tpu.memory_space<vmem>>) attributes {dimension_semantics = [], scalar_prefetch = 0 : i64, scratch_operands = 0 : i64, tpu.core_type = #tpu.core_type<tc>} {
    %c0 = arith.constant 0 : index
    %c0_0 = arith.constant 0 : index
    %0 = vector.load %arg2[%c0, %c0_0] : memref<8x8xf32, #tpu.memory_space<vmem>>, vector<8x8xf32>
    %cst = arith.constant 0.000000e+00 : f32
    %1 = vector.broadcast %cst : f32 to vector<8x8xf32>
    %2 = arith.cmpf ogt, %0, %1 : vector<8x8xf32>
    %cst_1 = arith.constant dense<0.000000e+00> : vector<8xf32>
    %3 = vector.multi_reduction <add>, %0, %cst_1 [1] : vector<8x8xf32> to vector<8xf32>
    %4 = vector.shape_cast %3 : vector<8xf32> to vector<8x1xf32>
    %cst_2 = arith.constant 0.000000e+00 : f32
    %5 = vector.broadcast %cst_2 : f32 to vector<8x1xf32>
    %6 = arith.cmpf ogt, %4, %5 : vector<8x1xf32>
    %c0_3 = arith.constant 0 : index
    %c0_4 = arith.constant 0 : index
    %7 = vector.load %arg1[%c0_3, %c0_4] : memref<8x16xf32, #tpu.memory_space<vmem>>, vector<8x16xf32>
    %c0_5 = arith.constant 0 : index
    %c0_6 = arith.constant 0 : index
    %8 = vector.load %arg3[%c0_5, %c0_6] : memref<16x24xf32, #tpu.memory_space<vmem>>, vector<16x24xf32>
    %cst_7 = arith.constant dense<0.000000e+00> : vector<8x24xf32>
    %9 = tpu.matmul %7, %8, %cst_7 {dimension_numbers = #tpu.dot_dimension_numbers<[1], [0], [0], [1], [0, 0, 1, 1], [], []>} : vector<8x16xf32>, vector<16x24xf32>, vector<8x24xf32> -> vector<8x24xf32>
    %c0_8 = arith.constant 0 : index
    %c0_9 = arith.constant 0 : index
    %10 = vector.load %arg4[%c0_8, %c0_9] : memref<1x24xf32, #tpu.memory_space<vmem>>, vector<1x24xf32>
    %11 = vector.broadcast %10 : vector<1x24xf32> to vector<8x24xf32>
    %12 = arith.addf %9, %11 : vector<8x24xf32>
    %cst_10 = arith.constant 0.000000e+00 : f32
    %13 = vector.broadcast %cst_10 : f32 to vector<8x24xf32>
    %14 = arith.maximumf %12, %13 : vector<8x24xf32>
    %c0_11 = arith.constant 0 : index
    %c0_12 = arith.constant 0 : index
    %15 = vector.load %arg0[%c0_11, %c0_12] : memref<8x24xf32, #tpu.memory_space<vmem>>, vector<8x24xf32>
    %c0_13 = arith.constant 0 : index
    %c0_14 = arith.constant 0 : index
    %16 = vector.load %arg5[%c0_13, %c0_14] : memref<24x24xf32, #tpu.memory_space<vmem>>, vector<24x24xf32>
    %cst_15 = arith.constant dense<0.000000e+00> : vector<8x24xf32>
    %17 = tpu.matmul %15, %16, %cst_15 {dimension_numbers = #tpu.dot_dimension_numbers<[1], [0], [0], [1], [0, 0, 1, 1], [], []>} : vector<8x24xf32>, vector<24x24xf32>, vector<8x24xf32> -> vector<8x24xf32>
    %c0_16 = arith.constant 0 : index
    %c0_17 = arith.constant 0 : index
    %18 = vector.load %arg6[%c0_16, %c0_17] : memref<1x24xf32, #tpu.memory_space<vmem>>, vector<1x24xf32>
    %19 = vector.broadcast %18 : vector<1x24xf32> to vector<8x24xf32>
    %20 = arith.addf %17, %19 : vector<8x24xf32>
    %cst_18 = arith.constant 0.204124153 : f32
    %21 = vector.broadcast %cst_18 : f32 to vector<8x24xf32>
    %22 = arith.mulf %20, %21 : vector<8x24xf32>
    %c0_19 = arith.constant 0 : index
    %c0_20 = arith.constant 0 : index
    %23 = vector.load %arg7[%c0_19, %c0_20] : memref<24x48xf32, #tpu.memory_space<vmem>>, vector<24x48xf32>
    %cst_21 = arith.constant dense<0.000000e+00> : vector<8x48xf32>
    %24 = tpu.matmul %14, %23, %cst_21 {dimension_numbers = #tpu.dot_dimension_numbers<[1], [0], [0], [1], [0, 0, 1, 1], [], []>} : vector<8x24xf32>, vector<24x48xf32>, vector<8x48xf32> -> vector<8x48xf32>
    %c0_22 = arith.constant 0 : index
    %c0_23 = arith.constant 0 : index
    %25 = vector.load %arg8[%c0_22, %c0_23] : memref<1x48xf32, #tpu.memory_space<vmem>>, vector<1x48xf32>
    %26 = vector.broadcast %25 : vector<1x48xf32> to vector<8x48xf32>
    %27 = arith.addf %24, %26 : vector<8x48xf32>
    %28 = vector.extract_strided_slice %27 {offsets = [0, 0], sizes = [8, 24], strides = [1, 1]} : vector<8x48xf32> to vector<8x24xf32>
    %29 = vector.extract_strided_slice %27 {offsets = [0, 24], sizes = [8, 24], strides = [1, 1]} : vector<8x48xf32> to vector<8x24xf32>
    %30 = tpu.transpose %28, [1, 0] : vector<8x24xf32> -> vector<24x8xf32>
    %cst_24 = arith.constant dense<0.000000e+00> : vector<8x8xf32>
    %31 = tpu.matmul %22, %30, %cst_24 {dimension_numbers = #tpu.dot_dimension_numbers<[1], [0], [0], [1], [0, 0, 1, 1], [], []>} : vector<8x24xf32>, vector<24x8xf32>, vector<8x8xf32> -> vector<8x8xf32>
    %cst_25 = arith.constant -1.000000e+30 : f32
    %32 = vector.broadcast %cst_25 : f32 to vector<8x8xf32>
    %33 = arith.select %2, %31, %32 : vector<8x8xi1>, vector<8x8xf32>
    %cst_26 = arith.constant dense<0xFF800000> : vector<8xf32>
    %34 = vector.multi_reduction <maximumf>, %33, %cst_26 [1] : vector<8x8xf32> to vector<8xf32>
    %35 = vector.shape_cast %34 : vector<8xf32> to vector<8x1xf32>
    %36 = vector.broadcast %35 : vector<8x1xf32> to vector<8x8xf32>
    %37 = arith.subf %33, %36 : vector<8x8xf32>
    %38 = math.exp %37 : vector<8x8xf32>
    %cst_27 = arith.constant dense<0.000000e+00> : vector<8xf32>
    %39 = vector.multi_reduction <add>, %38, %cst_27 [1] : vector<8x8xf32> to vector<8xf32>
    %40 = vector.shape_cast %39 : vector<8xf32> to vector<8x1xf32>
    %41 = tpu.reciprocal %40 {approx = true} : vector<8x1xf32> -> vector<8x1xf32>
    %42 = vector.broadcast %41 : vector<8x1xf32> to vector<8x8xf32>
    %43 = arith.mulf %38, %42 : vector<8x8xf32>
    %cst_28 = arith.constant dense<0.000000e+00> : vector<8x24xf32>
    %44 = tpu.matmul %43, %29, %cst_28 {dimension_numbers = #tpu.dot_dimension_numbers<[1], [0], [0], [1], [0, 0, 1, 1], [], []>} : vector<8x8xf32>, vector<8x24xf32>, vector<8x24xf32> -> vector<8x24xf32>
    %c0_29 = arith.constant 0 : index
    %c0_30 = arith.constant 0 : index
    %45 = vector.load %arg9[%c0_29, %c0_30] : memref<24x24xf32, #tpu.memory_space<vmem>>, vector<24x24xf32>
    %cst_31 = arith.constant dense<0.000000e+00> : vector<8x24xf32>
    %46 = tpu.matmul %44, %45, %cst_31 {dimension_numbers = #tpu.dot_dimension_numbers<[1], [0], [0], [1], [0, 0, 1, 1], [], []>} : vector<8x24xf32>, vector<24x24xf32>, vector<8x24xf32> -> vector<8x24xf32>
    %c0_32 = arith.constant 0 : index
    %c0_33 = arith.constant 0 : index
    %47 = vector.load %arg10[%c0_32, %c0_33] : memref<1x24xf32, #tpu.memory_space<vmem>>, vector<1x24xf32>
    %48 = vector.broadcast %47 : vector<1x24xf32> to vector<8x24xf32>
    %49 = arith.addf %46, %48 : vector<8x24xf32>
    %cst_34 = arith.constant 0.000000e+00 : f32
    %50 = vector.shape_cast %6 : vector<8x1xi1> to vector<8x1xi1>
    %51 = vector.broadcast %50 : vector<8x1xi1> to vector<8x24xi1>
    %52 = vector.broadcast %cst_34 : f32 to vector<8x24xf32>
    %53 = arith.select %51, %49, %52 : vector<8x24xi1>, vector<8x24xf32>
    %c0_35 = arith.constant 0 : index
    %c0_36 = arith.constant 0 : index
    %54 = vector.load %arg11[%c0_35, %c0_36] : memref<8x24xf32, #tpu.memory_space<vmem>>, vector<8x24xf32>
    tpu.vector_store %arg11[%c0_35, %c0_36], %53 {strides = array<i32>} : memref<8x24xf32, #tpu.memory_space<vmem>>, vector<8x24xf32>,
    return
  }
}

module attributes {stable_mosaic.version = 11 : i64} {
  func.func @_collect_kernel(%arg0: memref<8x16xf32, #tpu.memory_space<vmem>>, %arg1: memref<8x16xf32, #tpu.memory_space<vmem>>, %arg2: memref<8x8xf32, #tpu.memory_space<vmem>>, %arg3: memref<16x16xf32, #tpu.memory_space<vmem>>, %arg4: memref<1x16xf32, #tpu.memory_space<vmem>>, %arg5: memref<16x16xf32, #tpu.memory_space<vmem>>, %arg6: memref<1x16xf32, #tpu.memory_space<vmem>>, %arg7: memref<16x32xf32, #tpu.memory_space<vmem>>, %arg8: memref<1x32xf32, #tpu.memory_space<vmem>>, %arg9: memref<16x16xf32, #tpu.memory_space<vmem>>, %arg10: memref<1x16xf32, #tpu.memory_space<vmem>>, %arg11: memref<8x16xf32, #tpu.memory_space<vmem>>) attributes {dimension_semantics = [], scalar_prefetch = 0 : i64, scratch_operands = 0 : i64, tpu.core_type = #tpu.core_type<tc>} {
    %c0 = arith.constant 0 : index
    %c0_0 = arith.constant 0 : index
    %0 = vector.load %arg2[%c0, %c0_0] : memref<8x8xf32, #tpu.memory_space<vmem>>, vector<8x8xf32>
    %cst = arith.constant 0.000000e+00 : f32
    %1 = vector.broadcast %cst : f32 to vector<8x8xf32>
    %2 = arith.cmpf ogt, %0, %1 : vector<8x8xf32>
    %cst_1 = arith.constant dense<0.000000e+00> : vector<8xf32>
    %3 = vector.multi_reduction <add>, %0, %cst_1 [1] : vector<8x8xf32> to vector<8xf32>
    %4 = vector.shape_cast %3 : vector<8xf32> to vector<8x1xf32>
    %cst_2 = arith.constant 0.000000e+00 : f32
    %5 = vector.broadcast %cst_2 : f32 to vector<8x1xf32>
    %6 = arith.cmpf ogt, %4, %5 : vector<8x1xf32>
    %c0_3 = arith.constant 0 : index
    %c0_4 = arith.constant 0 : index
    %7 = vector.load %arg1[%c0_3, %c0_4] : memref<8x16xf32, #tpu.memory_space<vmem>>, vector<8x16xf32>
    %c0_5 = arith.constant 0 : index
    %c0_6 = arith.constant 0 : index
    %8 = vector.load %arg3[%c0_5, %c0_6] : memref<16x16xf32, #tpu.memory_space<vmem>>, vector<16x16xf32>
    %cst_7 = arith.constant dense<0.000000e+00> : vector<8x16xf32>
    %9 = tpu.matmul %7, %8, %cst_7 {dimension_numbers = #tpu.dot_dimension_numbers<[1], [0], [0], [1], [0, 0, 1, 1], [], []>} : vector<8x16xf32>, vector<16x16xf32>, vector<8x16xf32> -> vector<8x16xf32>
    %c0_8 = arith.constant 0 : index
    %c0_9 = arith.constant 0 : index
    %10 = vector.load %arg4[%c0_8, %c0_9] : memref<1x16xf32, #tpu.memory_space<vmem>>, vector<1x16xf32>
    %11 = vector.broadcast %10 : vector<1x16xf32> to vector<8x16xf32>
    %12 = arith.addf %9, %11 : vector<8x16xf32>
    %cst_10 = arith.constant 0.000000e+00 : f32
    %13 = vector.broadcast %cst_10 : f32 to vector<8x16xf32>
    %14 = arith.maximumf %12, %13 : vector<8x16xf32>
    %c0_11 = arith.constant 0 : index
    %c0_12 = arith.constant 0 : index
    %15 = vector.load %arg0[%c0_11, %c0_12] : memref<8x16xf32, #tpu.memory_space<vmem>>, vector<8x16xf32>
    %c0_13 = arith.constant 0 : index
    %c0_14 = arith.constant 0 : index
    %16 = vector.load %arg5[%c0_13, %c0_14] : memref<16x16xf32, #tpu.memory_space<vmem>>, vector<16x16xf32>
    %cst_15 = arith.constant dense<0.000000e+00> : vector<8x16xf32>
    %17 = tpu.matmul %15, %16, %cst_15 {dimension_numbers = #tpu.dot_dimension_numbers<[1], [0], [0], [1], [0, 0, 1, 1], [], []>} : vector<8x16xf32>, vector<16x16xf32>, vector<8x16xf32> -> vector<8x16xf32>
    %c0_16 = arith.constant 0 : index
    %c0_17 = arith.constant 0 : index
    %18 = vector.load %arg6[%c0_16, %c0_17] : memref<1x16xf32, #tpu.memory_space<vmem>>, vector<1x16xf32>
    %19 = vector.broadcast %18 : vector<1x16xf32> to vector<8x16xf32>
    %20 = arith.addf %17, %19 : vector<8x16xf32>
    %cst_18 = arith.constant 2.500000e-01 : f32
    %21 = vector.broadcast %cst_18 : f32 to vector<8x16xf32>
    %22 = arith.mulf %20, %21 : vector<8x16xf32>
    %c0_19 = arith.constant 0 : index
    %c0_20 = arith.constant 0 : index
    %23 = vector.load %arg7[%c0_19, %c0_20] : memref<16x32xf32, #tpu.memory_space<vmem>>, vector<16x32xf32>
    %cst_21 = arith.constant dense<0.000000e+00> : vector<8x32xf32>
    %24 = tpu.matmul %14, %23, %cst_21 {dimension_numbers = #tpu.dot_dimension_numbers<[1], [0], [0], [1], [0, 0, 1, 1], [], []>} : vector<8x16xf32>, vector<16x32xf32>, vector<8x32xf32> -> vector<8x32xf32>
    %c0_22 = arith.constant 0 : index
    %c0_23 = arith.constant 0 : index
    %25 = vector.load %arg8[%c0_22, %c0_23] : memref<1x32xf32, #tpu.memory_space<vmem>>, vector<1x32xf32>
    %26 = vector.broadcast %25 : vector<1x32xf32> to vector<8x32xf32>
    %27 = arith.addf %24, %26 : vector<8x32xf32>
    %28 = vector.extract_strided_slice %27 {offsets = [0, 0], sizes = [8, 16], strides = [1, 1]} : vector<8x32xf32> to vector<8x16xf32>
    %29 = vector.extract_strided_slice %27 {offsets = [0, 16], sizes = [8, 16], strides = [1, 1]} : vector<8x32xf32> to vector<8x16xf32>
    %30 = tpu.transpose %28, [1, 0] : vector<8x16xf32> -> vector<16x8xf32>
    %cst_24 = arith.constant dense<0.000000e+00> : vector<8x8xf32>
    %31 = tpu.matmul %22, %30, %cst_24 {dimension_numbers = #tpu.dot_dimension_numbers<[1], [0], [0], [1], [0, 0, 1, 1], [], []>} : vector<8x16xf32>, vector<16x8xf32>, vector<8x8xf32> -> vector<8x8xf32>
    %cst_25 = arith.constant -1.000000e+30 : f32
    %32 = vector.broadcast %cst_25 : f32 to vector<8x8xf32>
    %33 = arith.select %2, %31, %32 : vector<8x8xi1>, vector<8x8xf32>
    %cst_26 = arith.constant dense<0xFF800000> : vector<8xf32>
    %34 = vector.multi_reduction <maximumf>, %33, %cst_26 [1] : vector<8x8xf32> to vector<8xf32>
    %35 = vector.shape_cast %34 : vector<8xf32> to vector<8x1xf32>
    %36 = vector.broadcast %35 : vector<8x1xf32> to vector<8x8xf32>
    %37 = arith.subf %33, %36 : vector<8x8xf32>
    %38 = math.exp %37 : vector<8x8xf32>
    %cst_27 = arith.constant dense<0.000000e+00> : vector<8xf32>
    %39 = vector.multi_reduction <add>, %38, %cst_27 [1] : vector<8x8xf32> to vector<8xf32>
    %40 = vector.shape_cast %39 : vector<8xf32> to vector<8x1xf32>
    %41 = tpu.reciprocal %40 {approx = true} : vector<8x1xf32> -> vector<8x1xf32>
    %42 = vector.broadcast %41 : vector<8x1xf32> to vector<8x8xf32>
    %43 = arith.mulf %38, %42 : vector<8x8xf32>
    %cst_28 = arith.constant dense<0.000000e+00> : vector<8x16xf32>
    %44 = tpu.matmul %43, %29, %cst_28 {dimension_numbers = #tpu.dot_dimension_numbers<[1], [0], [0], [1], [0, 0, 1, 1], [], []>} : vector<8x8xf32>, vector<8x16xf32>, vector<8x16xf32> -> vector<8x16xf32>
    %c0_29 = arith.constant 0 : index
    %c0_30 = arith.constant 0 : index
    %45 = vector.load %arg9[%c0_29, %c0_30] : memref<16x16xf32, #tpu.memory_space<vmem>>, vector<16x16xf32>
    %cst_31 = arith.constant dense<0.000000e+00> : vector<8x16xf32>
    %46 = tpu.matmul %44, %45, %cst_31 {dimension_numbers = #tpu.dot_dimension_numbers<[1], [0], [0], [1], [0, 0, 1, 1], [], []>} : vector<8x16xf32>, vector<16x16xf32>, vector<8x16xf32> -> vector<8x16xf32>
    %c0_32 = arith.constant 0 : index
    %c0_33 = arith.constant 0 : index
    %47 = vector.load %arg10[%c0_32, %c0_33] : memref<1x16xf32, #tpu.memory_space<vmem>>, vector<1x16xf32>
    %48 = vector.broadcast %47 : vector<1x16xf32> to vector<8x16xf32>
    %49 = arith.addf %46, %48 : vector<8x16xf32>
    %cst_34 = arith.constant 0.000000e+00 : f32
    %50 = vector.shape_cast %6 : vector<8x1xi1> to vector<8x1xi1>
    %51 = vector.broadcast %50 : vector<8x1xi1> to vector<8x16xi1>
    %52 = vector.broadcast %cst_34 : f32 to vector<8x16xf32>
    %53 = arith.select %51, %49, %52 : vector<8x16xi1>, vector<8x16xf32>
    %c0_35 = arith.constant 0 : index
    %c0_36 = arith.constant 0 : index
    %54 = vector.load %arg11[%c0_35, %c0_36] : memref<8x16xf32, #tpu.memory_space<vmem>>, vector<8x16xf32>
    tpu.vector_store %arg11[%c0_35, %c0_36], %53 {strides = array<i32>} : memref<8x16xf32, #tpu.memory_space<vmem>>, vector<8x16xf32>,
    return
  }
}

</mosaic_0001>

<bundles_post_ra>
// kernel: grcnn_forward.12
= control target key start
LH: loop header
LB: loop body
LE: loop exit
PB: predicated region body
PF: predicated region fallthrough
CT: control target
= control target key end

     0   :  { %v251_v0 = vmov 0.0   ;;  %vm252_vm0 = vmmov 0   ;;  %vm36_vm1 = vcmask 523264   ;;  %vm122_vm2 = vcmask 261120   ;;  %s331_s1 = inlined_call_operand.vmem [shape: f32[64,32], index: 1, kind: input, shape index: {}]   ;;  %s332_s3 = inlined_call_operand.vmem [shape: f32[32,32], index: 3, kind: input, shape index: {}]   ;;  %s333_s0 = inlined_call_operand.vmem [shape: f32[8,64], index: 0, kind: input, shape index: {}]   ;;  %s334_s2 = inlined_call_operand.vmem [shape: f32[1,32], index: 2, kind: input, shape index: {}]   ;;  %s335_s4 = inlined_call_operand.vmem [shape: f32[1,32], index: 4, kind: input, shape index: {}]   ;;  %s336_s5 = inlined_call_operand.vmem [shape: f32[8,32], index: 5, kind: output, shape index: {}]  }
   0x1   :  { %219 = vmatprep.subr.mxu0 %v251_v0  ;;  %v28_v1 = vld [vmem:[%s331_s1 + $0x38] sm:$0xff]  ;;  %v27_v2 = vld [vmem:[%s331_s1 + $0x30] sm:$0xff]  ;;  %235 = vmatprep.mubr.msk.f32.mxu0 %vm252_vm0, %v251_v0  ;;  %v26_v3 = vld [vmem:[%s331_s1 + $0x28] sm:$0xff] }
   0x2   :  { %220 = vmatpush3.msra.mxu0 %v28_v1  ;;  %238 = vmatprep.subr.mxu1 %v251_v0  ;;  %v114_v4 = vld [vmem:[%s332_s3 + $0x18] sm:$0xff]  ;;  %v25_v5 = vld [vmem:[%s331_s1 + $0x20] sm:$0xff]  ;;  %v23_v7 = vld [vmem:[%s331_s1 + $0x10] sm:$0xff] }
   0x3   :  { %221 = vmatprep.subr.mxu0 %v251_v0  ;;  %246 = vmatprep.mubr.msk.f32.mxu1 %vm252_vm0, %v251_v0  ;;  %v24_v6 = vld [vmem:[%s331_s1 + $0x18] sm:$0xff]  ;;  %v22_v8 = vld [vmem:[%s331_s1 + $0x8] sm:$0xff]  ;;  %v21_v9 = vld [vmem:[%s331_s1] sm:$0xff] }
   0x4   :  { %222 = vmatpush3.msra.mxu0 %v27_v2  ;;  %239 = vmatpush3.msra.mxu1 %v114_v4  ;;  %v20_v10 = vld [vmem:[%s333_s0] sm:$0xff]  ;;  %v113_v11 = vld [vmem:[%s332_s3 + $0x10] sm:$0xff]  ;;  %v112_v12 = vld [vmem:[%s332_s3 + $0x8] sm:$0xff] }
   0x5   :  { %223 = vmatprep.subr.mxu0 %v251_v0  ;;  %240 = vmatprep.subr.mxu1 %v251_v0  ;;  %v111_v13 = vld [vmem:[%s332_s3] sm:$0xff] }
   0x6   :  { %224 = vmatpush3.msra.mxu0 %v26_v3  ;;  %241 = vmatpush3.msra.mxu1 %v113_v11  ;;  %v201_v14 = vld [vmem:[%s334_s2] ss:$0 sm:$0xff] }
   0x7   :  { %225 = vmatprep.subr.mxu0 %v251_v0  ;;  %242 = vmatprep.subr.mxu1 %v251_v0  ;;  %v203_v19 = vld [vmem:[%s335_s4] ss:$0 sm:$0xff] }
   0x8   :  { %226 = vmatpush3.msra.mxu0 %v25_v5  ;;  %243 = vmatpush3.msra.mxu1 %v112_v12 }
   0x9   :  { %227 = vmatprep.subr.mxu0 %v251_v0  ;;  %244 = vmatprep.subr.mxu1 %v251_v0 }
   0xa   :  { %228 = vmatpush3.msra.mxu0 %v24_v6  ;;  %245 = vmatpush3.msra.mxu1 %v111_v13 }
   0xb   :  { %229 = vmatprep.subr.mxu0 %v251_v0 }
   0xc   :  { %230 = vmatpush3.msra.mxu0 %v23_v7 }
   0xd   :  { %231 = vmatprep.subr.mxu0 %v251_v0 }
   0xe   :  { %232 = vmatpush3.msra.mxu0 %v22_v8 }
   0xf   :  { %233 = vmatprep.subr.mxu0 %v251_v0 }
  0x10   :  { %234 = vmatpush3.msra.mxu0 %v21_v9 }
  0x11   :  { %236 = vmatmul.mubr.msk.f32.vlgmr.msra.gmra.mxu0 %vm36_vm1, %v20_v10 }
  0xd1   :  { %v106_v15 = vpop.f32.mrf.mxu0 }
  0xd2   :  { %v107_v16 = vadd.f32 %v201_v14, %v106_v15 }
  0xd3   :  { %v237_v17 = vpop.f32.mrf.mxu0 }
  0xd4   :  { %v110_v18 = vmax.f32 %v107_v16, 0.0 }
  0xd6   :  { %247 = vmatmul.mubr.msk.f32.vlgmr.msra.gmra.mxu1 %vm122_vm2, %v110_v18 }
 0x196   :  { %v192_v20 = vpop.f32.mrf.mxu1 }
 0x197   :  { %v193_v21 = vadd.f32 %v203_v19, %v192_v20 }
 0x198   :  { %v248_v22 = vpop.f32.mrf.mxu1 }
 0x199   :  { %196 = vst.msk [vmem:[%s336_s5] sm:$0xff] %vm122_vm2, %v193_v21 }

// kernel: grcnn_forward.17
= control target key start
LH: loop header
LB: loop body
LE: loop exit
PB: predicated region body
PF: predicated region fallthrough
CT: control target
= control target key end

     0   :  { %v127_v0 = vmov 0.0   ;;  %vm128_vm0 = vmmov 0   ;;  %vm27_vm1 = vcmask 261120   ;;  %vm101_vm2 = vcmask 130048   ;;  %s170_s1 = inlined_call_operand.vmem [shape: f32[32,16], index: 1, kind: input, shape index: {}]   ;;  %s171_s0 = inlined_call_operand.vmem [shape: f32[8,32], index: 0, kind: input, shape index: {}]   ;;  %s172_s2 = inlined_call_operand.vmem [shape: f32[1,16], index: 2, kind: input, shape index: {}]   ;;  %s173_s3 = inlined_call_operand.vmem [shape: f32[8,16], index: 3, kind: output, shape index: {}]  }
   0x1   :  { %114 = vmatprep.subr.mxu0 %v127_v0  ;;  %v19_v1 = vld [vmem:[%s170_s1 + $0x18] sm:$0xff]  ;;  %v18_v2 = vld [vmem:[%s170_s1 + $0x10] sm:$0xff]  ;;  %122 = vmatprep.mubr.msk.f32.mxu0 %vm128_vm0, %v127_v0  ;;  %v14_v3 = vld [vmem:[%s171_s0] sm:$0xff] }
   0x2   :  { %115 = vmatpush3.msra.mxu0 %v19_v1  ;;  %v17_v4 = vld [vmem:[%s170_s1 + $0x8] sm:$0xff]  ;;  %v16_v5 = vld [vmem:[%s170_s1] sm:$0xff]  ;;  %v15_v6 = vmax.f32 %v14_v3, 0.0 }
   0x3   :  { %116 = vmatprep.subr.mxu0 %v127_v0  ;;  %v107_v7 = vld [vmem:[%s172_s2] ss:$0 sm:$0xff] }
   0x4   :  { %117 = vmatpush3.msra.mxu0 %v18_v2 }
   0x5   :  { %118 = vmatprep.subr.mxu0 %v127_v0 }
   0x6   :  { %119 = vmatpush3.msra.mxu0 %v17_v4 }
   0x7   :  { %120 = vmatprep.subr.mxu0 %v127_v0 }
   0x8   :  { %121 = vmatpush3.msra.mxu0 %v16_v5 }
   0x9   :  { %123 = vmatmul.mubr.msk.f32.vlgmr.msra.gmra.mxu0 %vm27_vm1, %v15_v6 }
  0xc9   :  { %v97_v8 = vpop.f32.mrf.mxu0 }
  0xca   :  { %v98_v9 = vadd.f32 %v107_v7, %v97_v8 }
  0xcb   :  { %v124_v10 = vpop.f32.mrf.mxu0 }
  0xcc   :  { %102 = vst.msk [vmem:[%s173_s3] sm:$0xff] %vm101_vm2, %v98_v9 }

// kernel: grcnn_forward.18
= control target key start
LH: loop header
LB: loop body
LE: loop exit
PB: predicated region body
PF: predicated region fallthrough
CT: control target
= control target key end

     0   :  { %v127_v0 = vmov 0.0   ;;  %vm128_vm0 = vmmov 0   ;;  %vm27_vm1 = vcmask 261120   ;;  %vm101_vm2 = vcmask 195584   ;;  %s170_s1 = inlined_call_operand.vmem [shape: f32[32,24], index: 1, kind: input, shape index: {}]   ;;  %s171_s0 = inlined_call_operand.vmem [shape: f32[8,32], index: 0, kind: input, shape index: {}]   ;;  %s172_s2 = inlined_call_operand.vmem [shape: f32[1,24], index: 2, kind: input, shape index: {}]   ;;  %s173_s3 = inlined_call_operand.vmem [shape: f32[8,24], index: 3, kind: output, shape index: {}]  }
   0x1   :  { %114 = vmatprep.subr.mxu0 %v127_v0  ;;  %v19_v1 = vld [vmem:[%s170_s1 + $0x18] sm:$0xff]  ;;  %v18_v2 = vld [vmem:[%s170_s1 + $0x10] sm:$0xff]  ;;  %122 = vmatprep.mubr.msk.f32.mxu0 %vm128_vm0, %v127_v0  ;;  %v14_v3 = vld [vmem:[%s171_s0] sm:$0xff] }
   0x2   :  { %115 = vmatpush3.msra.mxu0 %v19_v1  ;;  %v17_v4 = vld [vmem:[%s170_s1 + $0x8] sm:$0xff]  ;;  %v16_v5 = vld [vmem:[%s170_s1] sm:$0xff]  ;;  %v15_v6 = vmax.f32 %v14_v3, 0.0 }
   0x3   :  { %116 = vmatprep.subr.mxu0 %v127_v0  ;;  %v107_v7 = vld [vmem:[%s172_s2] ss:$0 sm:$0xff] }
   0x4   :  { %117 = vmatpush3.msra.mxu0 %v18_v2 }
   0x5   :  { %118 = vmatprep.subr.mxu0 %v127_v0 }
   0x6   :  { %119 = vmatpush3.msra.mxu0 %v17_v4 }
   0x7   :  { %120 = vmatprep.subr.mxu0 %v127_v0 }
   0x8   :  { %121 = vmatpush3.msra.mxu0 %v16_v5 }
   0x9   :  { %123 = vmatmul.mubr.msk.f32.vlgmr.msra.gmra.mxu0 %vm27_vm1, %v15_v6 }
  0xc9   :  { %v97_v8 = vpop.f32.mrf.mxu0 }
  0xca   :  { %v98_v9 = vadd.f32 %v107_v7, %v97_v8 }
  0xcb   :  { %v124_v10 = vpop.f32.mrf.mxu0 }
  0xcc   :  { %102 = vst.msk [vmem:[%s173_s3] sm:$0xff] %vm101_vm2, %v98_v9 }

// kernel: grcnn_forward.15
= control target key start
LH: loop header
LB: loop body
LE: loop exit
PB: predicated region body
PF: predicated region fallthrough
CT: control target
= control target key end

     0   :  { %v1241_v0 = vmov 0.0   ;;  %vm1242_vm0 = vmmov 0   ;;  %vm57_vm1 = vcmask 261120   ;;  %vm40_vm2 = vcmask 64512   ;;  %s1246_s27 = smov 104   ;;  %s1248_s30 = smov 72   ;;  %s1487_s3 = inlined_call_operand.vmem [shape: f32[32,32], index: 3, kind: input, shape index: {}]   ;;  %s1488_s5 = inlined_call_operand.vmem [shape: f32[32,32], index: 5, kind: input, shape index: {}]   ;;  %s1489_s1 = inlined_call_operand.vmem [shape: f32[8,32], index: 1, kind: input, shape index: {}, may-alias: {0,1}]   ;;  %s1490_s7 = inlined_call_operand.vmem [shape: f32[32,64], index: 7, kind: input, shape index: {}]   ;;  %s1491_s0 = inlined_call_operand.vmem [shape: f32[8,32], index: 0, kind: input, shape index: {}, may-alias: {0,1}]   ;;  %s1492_s4 = inlined_call_operand.vmem [shape: f32[1,32], index: 4, kind: input, shape index: {}]   ;;  %s1493_s6 = inlined_call_operand.vmem [shape: f32[1,32], index: 6, kind: input, shape index: {}]   ;;  %s1494_s8 = inlined_call_operand.vmem [shape: f32[1,64], index: 8, kind: input, shape index: {}]   ;;  %s1495_s2 = inlined_call_operand.vmem [shape: f32[8,8], index: 2, kind: input, shape index: {}]   ;;  %s1496_s9 = inlined_call_operand.vmem [shape: f32[32,32], index: 9, kind: input, shape index: {}]   ;;  %s1497_s10 = inlined_call_operand.vmem [shape: f32[1,32], index: 10, kind: input, shape index: {}]   ;;  %s1498_s11 = inlined_call_operand.vmem [shape: f32[8,32], index: 11, kind: output, shape index: {}]  }
   0x1   :  { %1129 = vmatprep.subr.mxu0 %v1241_v0  ;;  %v49_v1 = vld [vmem:[%s1487_s3 + $0x18] sm:$0xff]  ;;  %v48_v2 = vld [vmem:[%s1487_s3 + $0x10] sm:$0xff]  ;;  %1137 = vmatprep.mubr.msk.f32.mxu0 %vm1242_vm0, %v1241_v0  ;;  %v47_v4 = vld [vmem:[%s1487_s3 + $0x8] sm:$0xff]  ;;  %s1250_s19 = smov 8   ;;  %s1251_s20 = smov 16   ;;  %vm977_vm4 = vcmask 130048  }
   0x2   :  { %1130 = vmatpush3.msra.mxu0 %v49_v1  ;;  %1140 = vmatprep.subr.mxu1 %v1241_v0  ;;  %v136_v3 = vld [vmem:[%s1488_s5 + $0x18] sm:$0xff]  ;;  %v46_v5 = vld [vmem:[%s1487_s3] sm:$0xff]  ;;  %v135_v8 = vld [vmem:[%s1488_s5 + $0x10] sm:$0xff]  ;;  %s1249_s3 = smov 80   ;;  %s1252_s21 = smov 24   ;;  %vm979_vm5 = vcmask 195584  }
   0x3   :  { %1131 = vmatprep.subr.mxu0 %v1241_v0  ;;  %1141 = vmatpush3.msra.mxu1 %v136_v3  ;;  %v45_v6 = vld [vmem:[%s1489_s1] sm:$0xff]  ;;  %v221_v7 = vld [vmem:[%s1490_s7 + $0x18] sm:$0xff]  ;;  %v220_v9 = vld [vmem:[%s1490_s7 + $0x10] sm:$0xff] }
   0x4   :  { %1132 = vmatpush3.msra.mxu0 %v48_v2  ;;  %1142 = vmatprep.subr.mxu1 %v1241_v0  ;;  %v134_v10 = vld [vmem:[%s1488_s5 + $0x8] sm:$0xff]  ;;  %v133_v12 = vld [vmem:[%s1488_s5] sm:$0xff] }
   0x5   :  { %1133 = vmatprep.subr.mxu0 %v1241_v0  ;;  %1148 = vmatprep.mubr.msk.f32.mxu1 %vm1242_vm0, %v1241_v0  ;;  %v219_v11 = vld [vmem:[%s1490_s7 + $0x8] sm:$0xff]  ;;  %v218_v13 = vld [vmem:[%s1490_s7] sm:$0xff] }
   0x6   :  { %1134 = vmatpush3.msra.mxu0 %v47_v4  ;;  %1143 = vmatpush3.msra.mxu1 %v135_v8  ;;  %v132_v14 = vld [vmem:[%s1491_s0] sm:$0xff] }
   0x7   :  { %1135 = vmatprep.subr.mxu0 %v1241_v0  ;;  %1144 = vmatprep.subr.mxu1 %v1241_v0  ;;  %v1073_v15 = vld [vmem:[%s1492_s4] ss:$0 sm:$0xff]  ;;  %s1243_s4 = smov 96  }
   0x8   :  { %1136 = vmatpush3.msra.mxu0 %v46_v5  ;;  %1145 = vmatpush3.msra.mxu1 %v134_v10  ;;  %v1075_v22 = vld [vmem:[%s1493_s6] ss:$0 sm:$0xff]  ;;  %s1244_s6 = smov 120  }
   0x9   :  { %1138 = vmatmul.mubr.msk.f32.vlgmr.msra.gmra.mxu0 %vm57_vm1, %v45_v6  ;;  %1151 = vmatprep.subr.mxu0 %v1241_v0  ;;  %v1077_v24 = vld [vmem:[%s1494_s8] ss:$0 sm:$0xff]  ;;  %s1245_s8 = smov 112  }
   0xa   :  { %1152 = vmatpush3.msra.mxu0 %v221_v7  ;;  %1159 = vmatprep.mubr.msk.f32.mxu0 %vm1242_vm0, %v1241_v0  ;;  %v1418_v35 = vld [vmem:[%s1495_s2] sm:$0xff]  ;;  %s1247_s2 = smov 88  }
   0xb   :  { %1153 = vmatprep.subr.mxu0 %v1241_v0  ;;  %1146 = vmatprep.subr.mxu1 %v1241_v0  ;;  %vm39_vm3 = vcmp.gt.f32.partialorder %v1418_v35, 0.0 }
   0xc   :  { %1154 = vmatpush3.msra.mxu0 %v220_v9  ;;  %1147 = vmatpush3.msra.mxu1 %v133_v12 }
   0xd   :  { %1155 = vmatprep.subr.mxu0 %v1241_v0  ;;  %1149 = vmatmul.mubr.msk.f32.vlgmr.msra.gmra.mxu1 %vm57_vm1, %v132_v14 }
   0xe   :  { %1156 = vmatpush3.msra.mxu0 %v219_v11  ;;  %1162 = vmatprep.subr.mxu1 %v1241_v0 }
   0xf   :  { %1157 = vmatprep.subr.mxu0 %v1241_v0  ;;  %1164 = vmatprep.mubr.msk.f32.mxu1 %vm1242_vm0, %v1241_v0 }
  0x10   :  { %1158 = vmatpush3.msra.mxu0 %v218_v13 }
  0x11   :  { %1182 = vmatprep.subr.mxu0 %v1241_v0 }
  0xc9   :  { %v127_v16 = vpop.f32.mrf.mxu0 }
  0xca   :  { %v128_v17 = vadd.f32 %v1073_v15, %v127_v16 }
  0xcb   :  { %v1139_v18 = vpop.f32.mrf.mxu0 }
  0xcc   :  { %v131_v19 = vmax.f32 %v128_v17, 0.0 }
  0xcd   :  { %v213_v20 = vpop.f32.mrf.mxu1 }
  0xce   :  { %1160 = vmatmul.mubr.msk.f32.vlgmr.msra.gmra.mxu0 %vm57_vm1, %v131_v19  ;;  %v214_v23 = vadd.f32 %v1075_v22, %v213_v20 }
  0xcf   :  { %1184 = vmatprep.mubr.msk.f32.mxu0 %vm1242_vm0, %v1241_v0  ;;  %v1150_v21 = vpop.f32.mrf.mxu1 }
  0xd0   :  { %v217_v27 = vmul.f32 0.35355338, %v214_v23 }
 0x18e   :  { %v298_v25 = vpop.f32.mrf.mxu0 }
 0x18f   :  { %v1391_v26 = vadd.f32 %v1077_v24, %v298_v25 }
 0x190   :  { %v1161_v28 = vpop.f32.mrf.mxu0 }
 0x191   :  { %390 = vrot.lane.b32.xlu1 %v1391_v26, %s1243_s4  ;;  %1163 = vmatpush3.xpose.msk.msra.mxu1 %vm40_vm2, %v1391_v26  ;;  %v983_v28 = vld [vmem:[%s1496_s9 + $0x10] sm:$0xff] }
 0x192   :  { %1167 = vmatprep.subr.mxu1 %v1241_v0 }
 0x194   :  { %1165 = vmatmul.mubr.msk.f32.vlgmr.msra.gmra.mxu1 %vm40_vm2, %v217_v27 }
 0x195   :  { %468 = vrot.lane.b32.xlu1 %v1391_v26, %s1244_s6  ;;  %1169 = vmatprep.mubr.msk.f32.mxu1 %vm1242_vm0, %v1241_v0 }
 0x199   :  { %634 = vrot.lane.b32.xlu1 %v1391_v26, %s1245_s8 }
 0x19d   :  { %632 = vrot.lane.b32.xlu1 %v217_v27, %s1245_s8 }
 0x1a1   :  { %800 = vrot.lane.b32.xlu1 %v1391_v26, %s1246_s27 }
 0x1a5   :  { %798 = vrot.lane.b32.xlu1 %v217_v27, %s1246_s27 }
 0x203   :  { %v391_v29 = vpop.permute.xlu1 %390 }
 0x204   :  { %1168 = vmatpush3.msra.mxu1 %v391_v29  ;;  %v982_v29 = vld [vmem:[%s1496_s9 + $0x8] sm:$0xff] }
 0x205   :  { %1172 = vmatprep.subr.mxu1 %v1241_v0 }
 0x207   :  { %v469_v30 = vpop.permute.xlu1 %468 }
 0x20b   :  { %v635_v31 = vpop.permute.xlu1 %634 }
 0x20c   :  { %1183 = vmatpush3.xpose.msk.msra.mxu0 %vm40_vm2, %v635_v31 }
 0x20d   :  { %1192 = vmatprep.subr.mxu0 %v1241_v0 }
 0x20f   :  { %v633_v32 = vpop.permute.xlu1 %632 }
 0x210   :  { %1185 = vmatmul.mubr.msk.f32.vlgmr.msra.gmra.mxu0 %vm40_vm2, %v633_v32 }
 0x211   :  { %1194 = vmatprep.mubr.msk.f32.mxu0 %vm1242_vm0, %v1241_v0 }
 0x213   :  { %v801_v33 = vpop.permute.xlu1 %800 }
 0x214   :  { %1193 = vmatpush3.xpose.msk.msra.mxu0 %vm40_vm2, %v801_v33 }
 0x215   :  { %1202 = vmatprep.subr.mxu0 %v1241_v0 }
 0x217   :  { %v799_v34 = vpop.permute.xlu1 %798 }
 0x218   :  { %1195 = vmatmul.mubr.msk.f32.vlgmr.msra.gmra.mxu0 %vm40_vm2, %v799_v34 }
 0x219   :  { %1210 = vmatprep.mubr.msk.f32.mxu0 %vm1242_vm0, %v1241_v0 }
 0x254   :  { %v374_v36 = vpop.f32.mrf.mxu1 }
 0x255   :  { %v378_v37 = vsel %vm39_vm3, %v374_v36, -1e+30 }
 0x256   :  { %v1166_v38 = vpop.f32.mrf.mxu1  ;;  %v379_v39 = vsel %vm40_vm2, %v378_v37, -inf }
 0x257   :  { %380 = vmax.xlane.f32.xlu0 %v379_v39 }
 0x2d0   :  { %v706_v40 = vpop.f32.mrf.mxu0 }
 0x2d1   :  { %v710_v49 = vsel %vm39_vm3, %v706_v40, -1e+30 }
 0x2d2   :  { %v1186_v41 = vpop.f32.mrf.mxu0  ;;  %v711_v50 = vsel %vm40_vm2, %v710_v49, -inf }
 0x2d8   :  { %v872_v42 = vpop.f32.mrf.mxu0 }
 0x2d9   :  { %v876_v1 = vsel %vm39_vm3, %v872_v42, -1e+30 }
 0x2da   :  { %v1196_v43 = vpop.f32.mrf.mxu0  ;;  %v877_v2 = vsel %vm40_vm2, %v876_v1, -inf }
 0x2e0   :  { %v381_v44 = vpop.xlane.xlu0 %380 }
 0x2e1   :  { %v382_v45 = vsub.f32 %v378_v37, %v381_v44 }
 0x2e3   :  { %v383_v46 = vmul.f32 1.442695, %v382_v45  ;;  %v1091_v45 = vld [vmem:[%s1497_s10] ss:$0 sm:$0xff] }
 0x2e5   :  { %1225 = vpow2.f32 %v383_v46 }
 0x2f2   :  { %v1226_v47 = vpop.eup %1225 }
 0x2f3   :  { %v385_v48 = vsel %vm40_vm2, %v1226_v47, 0.0 }
 0x2f4   :  { %386 = vadd.xlane.f32.xlu0 %v385_v48 }
 0x30a   :  { %466 = vrot.lane.b32.xlu0 %v217_v27, %s1244_s6  ;;  %v984_v27 = vld [vmem:[%s1496_s9 + $0x18] sm:$0xff] }
 0x30b   :  { %1203 = vmatpush3.msra.mxu0 %v984_v27 }
 0x30c   :  { %1204 = vmatprep.subr.mxu0 %v1241_v0 }
 0x30d   :  { %1205 = vmatpush3.msra.mxu0 %v983_v28 }
 0x30e   :  { %1206 = vmatprep.subr.mxu0 %v1241_v0 }
 0x30f   :  { %1207 = vmatpush3.msra.mxu0 %v982_v29 }
 0x310   :  { %1208 = vmatprep.subr.mxu0 %v1241_v0 }
 0x329   :  { %712 = vmax.xlane.f32.xlu0 %v711_v50 }
 0x37d   :  { %v387_v51 = vpop.xlane.xlu0 %386 }
 0x37e   :  { %1227 = vrcp.f32 %v387_v51 }
 0x381   :  { %v467_v54 = vpop.permute.xlu0 %466 }
 0x38b   :  { %v1228_v52 = vpop.eup %1227 }
 0x38c   :  { %v389_v53 = vmul.f32 %v1228_v52, %v1226_v47 }
 0x38e   :  { %1170 = vmatmul.mubr.msk.f32.vlgmr.msra.gmra.mxu1 %vm40_vm2, %v389_v53 }
 0x38f   :  { %1173 = vmatpush3.xpose.msk.msra.mxu1 %vm40_vm2, %v469_v30  ;;  %1174 = vmatprep.mubr.msk.f32.mxu1 %vm1242_vm0, %v1241_v0  ;;  %v981_v30 = vld [vmem:[%s1496_s9] sm:$0xff] }
 0x390   :  { %1177 = vmatprep.subr.mxu1 %v1241_v0  ;;  %1209 = vmatpush3.msra.mxu0 %v981_v30 }
 0x392   :  { %1175 = vmatmul.mubr.msk.f32.vlgmr.msra.gmra.mxu1 %vm40_vm2, %v467_v54 }
 0x393   :  { %1179 = vmatprep.mubr.msk.f32.mxu1 %vm1242_vm0, %v1241_v0 }
 0x3b2   :  { %v713_v55 = vpop.xlane.xlu0 %712 }
 0x3b3   :  { %v714_v56 = vsub.f32 %v710_v49, %v713_v55 }
 0x3b5   :  { %v715_v57 = vmul.f32 1.442695, %v714_v56 }
 0x3b7   :  { %1229 = vpow2.f32 %v715_v57 }
 0x3c4   :  { %v1230_v3 = vpop.eup %1229 }
 0x3c5   :  { %v717_v4 = vsel %vm40_vm2, %v1230_v3, 0.0 }
 0x44e   :  { %v1437_v58 = vpop.f32.mrf.mxu1 }
 0x450   :  { %v1171_v59 = vpop.f32.mrf.mxu1 }
 0x452   :  { %v540_v60 = vpop.f32.mrf.mxu1 }
 0x453   :  { %v544_v61 = vsel %vm39_vm3, %v540_v60, -1e+30 }
 0x454   :  { %v1176_v62 = vpop.f32.mrf.mxu1  ;;  %v545_v63 = vsel %vm40_vm2, %v544_v61, -inf }
 0x455   :  { %546 = vmax.xlane.f32.xlu1 %v545_v63 }
 0x459   :  { %878 = vmax.xlane.f32.xlu1 %v877_v2 }
 0x45d   :  { %718 = vadd.xlane.f32.xlu1 %v717_v4 }
 0x46e   :  { %556 = vrot.lane.b32.xlu1 %v1391_v26, %s1247_s2 }
 0x472   :  { %888 = vrot.lane.b32.xlu1 %v1391_v26, %s1248_s30 }
 0x4de   :  { %v547_v5 = vpop.xlane.xlu1 %546 }
 0x4df   :  { %v548_v6 = vsub.f32 %v544_v61, %v547_v5 }
 0x4e1   :  { %v549_v9 = vmul.f32 1.442695, %v548_v6 }
 0x4e2   :  { %v879_v7 = vpop.xlane.xlu1 %878 }
 0x4e3   :  { %v880_v8 = vsub.f32 %v876_v1, %v879_v7 }
 0x4e5   :  { %v881_v10 = vmul.f32 1.442695, %v880_v8 }
 0x4e6   :  { %v719_v11 = vpop.xlane.xlu1 %718 }
 0x4e7   :  { %1231 = vpow2.f32 %v881_v10 }
 0x4e8   :  { %1233 = vpow2.f32 %v549_v9 }
 0x4ea   :  { %v557_v12 = vpop.permute.xlu1 %556 }
 0x4eb   :  { %1178 = vmatpush3.msra.mxu1 %v557_v12 }
 0x4ec   :  { %1187 = vmatprep.subr.mxu1 %v1241_v0 }
 0x4ee   :  { %v889_v25 = vpop.permute.xlu1 %888 }
 0x4f4   :  { %v1232_v13 = vpop.eup %1231 }
 0x4f5   :  { %v883_v14 = vsel %vm40_vm2, %v1232_v13, 0.0  ;;  %v1234_v15 = vpop.eup %1233 }
 0x4f6   :  { %884 = vadd.xlane.f32.xlu0 %v883_v14  ;;  %v551_v16 = vsel %vm40_vm2, %v1234_v15, 0.0 }
 0x4fa   :  { %552 = vadd.xlane.f32.xlu0 %v551_v16 }
 0x510   :  { %722 = vrot.lane.b32.xlu0 %v1391_v26, %s1249_s3 }
 0x57f   :  { %v885_v17 = vpop.xlane.xlu0 %884 }
 0x583   :  { %v553_v18 = vpop.xlane.xlu0 %552 }
 0x584   :  { %1235 = vrcp.f32 %v553_v18 }
 0x585   :  { %1237 = vrcp.f32 %v719_v11 }
 0x586   :  { %1239 = vrcp.f32 %v885_v17 }
 0x587   :  { %v723_v22 = vpop.permute.xlu0 %722 }
 0x591   :  { %v1236_v19 = vpop.eup %1235 }
 0x592   :  { %v555_v20 = vmul.f32 %v1236_v19, %v1234_v15  ;;  %v1238_v21 = vpop.eup %1237 }
 0x593   :  { %v721_v23 = vmul.f32 %v1238_v21, %v1230_v3  ;;  %v1240_v24 = vpop.eup %1239 }
 0x594   :  { %1180 = vmatmul.mubr.msk.f32.vlgmr.msra.gmra.mxu1 %vm40_vm2, %v555_v20  ;;  %v887_v26 = vmul.f32 %v1240_v24, %v1232_v13 }
 0x595   :  { %1188 = vmatpush3.msra.mxu1 %v723_v22  ;;  %1189 = vmatprep.mubr.msk.f32.mxu1 %vm1242_vm0, %v1241_v0 }
 0x596   :  { %1197 = vmatprep.subr.mxu1 %v1241_v0 }
 0x598   :  { %1190 = vmatmul.mubr.msk.f32.vlgmr.msra.gmra.mxu1 %vm40_vm2, %v721_v23 }
 0x599   :  { %1198 = vmatpush3.msra.mxu1 %v889_v25  ;;  %1199 = vmatprep.mubr.msk.f32.mxu1 %vm1242_vm0, %v1241_v0  ;;  %v41_v0 = vsel %vm40_vm2, %v1418_v35, 0.0 }
 0x59c   :  { %1200 = vmatmul.mubr.msk.f32.vlgmr.msra.gmra.mxu1 %vm40_vm2, %v887_v26 }
 0x654   :  { %v628_v31 = vpop.f32.mrf.mxu1 }
 0x655   :  { %965 = vrot.lane.b32.xlu1 %v628_v31, %s1250_s19 }
 0x656   :  { %v1181_v32 = vpop.f32.mrf.mxu1 }
 0x658   :  { %v794_v33 = vpop.f32.mrf.mxu1 }
 0x659   :  { %969 = vrot.lane.b32.xlu0 %v794_v33, %s1251_s20 }
 0x65a   :  { %v1191_v34 = vpop.f32.mrf.mxu1 }
 0x65c   :  { %v960_v36 = vpop.f32.mrf.mxu1 }
 0x65d   :  { %973 = vrot.lane.b32.xlu1 %v960_v36, %s1252_s21 }
 0x65e   :  { %v1201_v37 = vpop.f32.mrf.mxu1 }
 0x678   :  { %42 = vadd.xlane.f32.xlu0 %v41_v0 }
 0x6c7   :  { %v966_v38 = vpop.permute.xlu1 %965 }
 0x6c8   :  { %v976_v40 = vsel %vm40_vm2, %v1437_v58, %v966_v38 }
 0x6cb   :  { %v970_v39 = vpop.permute.xlu0 %969 }
 0x6cc   :  { %v978_v41 = vsel %vm977_vm4, %v976_v40, %v970_v39 }
 0x6cf   :  { %v974_v42 = vpop.permute.xlu1 %973 }
 0x6d0   :  { %v980_v43 = vsel %vm979_vm5, %v978_v41, %v974_v42 }
 0x6d1   :  { %1211 = vmatmul.mubr.msk.f32.vlgmr.msra.gmra.mxu0 %vm57_vm1, %v980_v43 }
 0x701   :  { %v43_v44 = vpop.xlane.xlu0 %42 }
 0x702   :  { %vm44_vm6 = vcmp.gt.f32.partialorder %v43_v44, 0.0 }
 0x791   :  { %v1061_v46 = vpop.f32.mrf.mxu0 }
 0x792   :  { %v1062_v35 = vadd.f32 %v1091_v45, %v1061_v46 }
 0x793   :  { %v1212_v47 = vpop.f32.mrf.mxu0 }
 0x794   :  { %v1067_v48 = vsel %vm44_vm6, %v1062_v35, 0.0 }
 0x795   :  { %1068 = vst.msk [vmem:[%s1498_s11] sm:$0xff] %vm57_vm1, %v1067_v48 }

// kernel: grcnn_forward.20
= control target key start
LH: loop header
LB: loop body
LE: loop exit
PB: predicated region body
PF: predicated region fallthrough
CT: control target
= control target key end

     0   :  { %v627_v0 = vmov 0.0   ;;  %vm628_vm0 = vmmov 0   ;;  %vm56_vm1 = vcmask 195584   ;;  %vm141_vm2 = vcmask 130048   ;;  %s774_s3 = inlined_call_operand.vmem [shape: f32[24,16], index: 3, kind: input, shape index: {}]   ;;  %s775_s5 = inlined_call_operand.vmem [shape: f32[16,16], index: 5, kind: input, shape index: {}]   ;;  %s776_s1 = inlined_call_operand.vmem [shape: f32[8,24], index: 1, kind: input, shape index: {}]   ;;  %s777_s0 = inlined_call_operand.vmem [shape: f32[8,16], index: 0, kind: input, shape index: {}]   ;;  %s778_s7 = inlined_call_operand.vmem [shape: f32[16,32], index: 7, kind: input, shape index: {}]   ;;  %s779_s4 = inlined_call_operand.vmem [shape: f32[1,16], index: 4, kind: input, shape index: {}]   ;;  %s780_s6 = inlined_call_operand.vmem [shape: f32[1,16], index: 6, kind: input, shape index: {}]   ;;  %s781_s8 = inlined_call_operand.vmem [shape: f32[1,32], index: 8, kind: input, shape index: {}]   ;;  %s782_s2 = inlined_call_operand.vmem [shape: f32[8,8], index: 2, kind: input, shape index: {}]   ;;  %s783_s9 = inlined_call_operand.vmem [shape: f32[16,16], index: 9, kind: input, shape index: {}]   ;;  %s784_s10 = inlined_call_operand.vmem [shape: f32[1,16], index: 10, kind: input, shape index: {}]   ;;  %s785_s11 = inlined_call_operand.vmem [shape: f32[8,16], index: 11, kind: output, shape index: {}]  }
   0x1   :  { %580 = vmatprep.subr.mxu0 %v627_v0  ;;  %v48_v1 = vld [vmem:[%s774_s3 + $0x10] sm:$0xff]  ;;  %v47_v2 = vld [vmem:[%s774_s3 + $0x8] sm:$0xff]  ;;  %586 = vmatprep.mubr.msk.f32.mxu0 %vm628_vm0, %v627_v0  ;;  %v132_v4 = vld [vmem:[%s775_s5] sm:$0xff]  ;;  %vm40_vm4 = vcmask 64512  }
   0x2   :  { %581 = vmatpush3.msra.mxu0 %v48_v1  ;;  %589 = vmatprep.subr.mxu1 %v627_v0  ;;  %v133_v3 = vld [vmem:[%s775_s5 + $0x8] sm:$0xff]  ;;  %v46_v5 = vld [vmem:[%s774_s3] sm:$0xff] }
   0x3   :  { %582 = vmatprep.subr.mxu0 %v627_v0  ;;  %590 = vmatpush3.msra.mxu1 %v133_v3  ;;  %v45_v6 = vld [vmem:[%s776_s1] sm:$0xff]  ;;  %v217_v8 = vld [vmem:[%s778_s7 + $0x8] sm:$0xff] }
   0x4   :  { %583 = vmatpush3.msra.mxu0 %v47_v2  ;;  %591 = vmatprep.subr.mxu1 %v627_v0  ;;  %v131_v7 = vld [vmem:[%s777_s0] sm:$0xff]  ;;  %v463_v35 = vld [vmem:[%s783_s9 + $0x8] sm:$0xff] }
   0x5   :  { %584 = vmatprep.subr.mxu0 %v627_v0  ;;  %592 = vmatpush3.msra.mxu1 %v132_v4  ;;  %v216_v9 = vld [vmem:[%s778_s7] sm:$0xff] }
   0x6   :  { %585 = vmatpush3.msra.mxu0 %v46_v5  ;;  %593 = vmatprep.mubr.msk.f32.mxu1 %vm628_vm0, %v627_v0  ;;  %v552_v10 = vld [vmem:[%s779_s4] ss:$0 sm:$0xff]  ;;  %s629_s4 = smov 112  }
   0x7   :  { %587 = vmatmul.mubr.msk.f32.vlgmr.msra.gmra.mxu0 %vm56_vm1, %v45_v6  ;;  %594 = vmatmul.mubr.msk.f32.vlgmr.msra.gmra.mxu1 %vm141_vm2, %v131_v7  ;;  %v554_v17 = vld [vmem:[%s780_s6] ss:$0 sm:$0xff] }
   0x8   :  { %596 = vmatprep.subr.mxu1 %v627_v0  ;;  %600 = vmatprep.mubr.msk.f32.mxu1 %vm628_vm0, %v627_v0  ;;  %v556_v18 = vld [vmem:[%s781_s8] ss:$0 sm:$0xff] }
   0x9   :  { %603 = vmatprep.subr.mxu0 %v627_v0  ;;  %605 = vmatprep.mubr.msk.f32.mxu0 %vm628_vm0, %v627_v0  ;;  %v38_v25 = vld [vmem:[%s782_s2] sm:$0xff] }
   0xa   :  { %597 = vmatpush3.msra.mxu1 %v217_v8  ;;  %vm39_vm3 = vcmp.gt.f32.partialorder %v38_v25, 0.0  ;;  %v462_v39 = vld [vmem:[%s783_s9] sm:$0xff]  ;;  %v41_v40 = vsel %vm40_vm4, %v38_v25, 0.0 }
   0xb   :  { %598 = vmatprep.subr.mxu1 %v627_v0  ;;  %v561_v44 = vld [vmem:[%s784_s10] ss:$0 sm:$0xff] }
   0xc   :  { %599 = vmatpush3.msra.mxu1 %v216_v9 }
   0xd   :  { %608 = vmatprep.subr.mxu1 %v627_v0 }
  0xc7   :  { %v126_v11 = vpop.f32.mrf.mxu0  ;;  %v211_v12 = vpop.f32.mrf.mxu1 }
  0xc8   :  { %v127_v13 = vadd.f32 %v552_v10, %v126_v11  ;;  %v212_v19 = vadd.f32 %v554_v17, %v211_v12 }
  0xc9   :  { %v588_v14 = vpop.f32.mrf.mxu0  ;;  %v595_v15 = vpop.f32.mrf.mxu1 }
  0xca   :  { %v130_v16 = vmax.f32 %v127_v13, 0.0  ;;  %v215_v23 = vmul.f32 0.25, %v212_v19 }
  0xcc   :  { %601 = vmatmul.mubr.msk.f32.vlgmr.msra.gmra.mxu1 %vm141_vm2, %v130_v16 }
  0xcd   :  { %610 = vmatprep.mubr.msk.f32.mxu1 %vm628_vm0, %v627_v0 }
 0x18c   :  { %v294_v20 = vpop.f32.mrf.mxu1 }
 0x18d   :  { %v295_v21 = vadd.f32 %v556_v18, %v294_v20 }
 0x18e   :  { %v602_v22 = vpop.f32.mrf.mxu1 }
 0x18f   :  { %386 = vrot.lane.b32.xlu1 %v295_v21, %s629_s4  ;;  %604 = vmatpush3.xpose.msk.msra.mxu0 %vm141_vm2, %v295_v21 }
 0x190   :  { %613 = vmatprep.subr.mxu0 %v627_v0 }
 0x192   :  { %606 = vmatmul.mubr.msk.f32.vlgmr.msra.gmra.mxu0 %vm141_vm2, %v215_v23 }
 0x193   :  { %617 = vmatprep.mubr.msk.f32.mxu0 %vm628_vm0, %v627_v0  ;;  %614 = vmatpush3.msra.mxu0 %v463_v35 }
 0x194   :  { %615 = vmatprep.subr.mxu0 %v627_v0 }
 0x195   :  { %616 = vmatpush3.msra.mxu0 %v462_v39 }
 0x1b3   :  { %42 = vadd.xlane.f32.xlu1 %v41_v40 }
 0x201   :  { %v387_v24 = vpop.permute.xlu1 %386 }
 0x202   :  { %609 = vmatpush3.msra.mxu1 %v387_v24 }
 0x23c   :  { %v43_v43 = vpop.xlane.xlu1 %42 }
 0x23d   :  { %vm44_vm5 = vcmp.gt.f32.partialorder %v43_v43, 0.0 }
 0x252   :  { %v370_v26 = vpop.f32.mrf.mxu0 }
 0x253   :  { %v374_v27 = vsel %vm39_vm3, %v370_v26, -1e+30 }
 0x254   :  { %v607_v28 = vpop.f32.mrf.mxu0  ;;  %v375_v29 = vsel %vm40_vm4, %v374_v27, -inf }
 0x255   :  { %376 = vmax.xlane.f32.xlu0 %v375_v29 }
 0x2de   :  { %v377_v30 = vpop.xlane.xlu0 %376 }
 0x2df   :  { %v378_v31 = vsub.f32 %v374_v27, %v377_v30 }
 0x2e1   :  { %v379_v32 = vmul.f32 1.442695, %v378_v31 }
 0x2e3   :  { %623 = vpow2.f32 %v379_v32 }
 0x2f0   :  { %v624_v33 = vpop.eup %623 }
 0x2f1   :  { %v381_v34 = vsel %vm40_vm4, %v624_v33, 0.0 }
 0x2f2   :  { %382 = vadd.xlane.f32.xlu0 %v381_v34 }
 0x37b   :  { %v383_v36 = vpop.xlane.xlu0 %382 }
 0x37c   :  { %625 = vrcp.f32 %v383_v36 }
 0x389   :  { %v626_v37 = vpop.eup %625 }
 0x38a   :  { %v385_v38 = vmul.f32 %v626_v37, %v624_v33 }
 0x38c   :  { %611 = vmatmul.mubr.msk.f32.vlgmr.msra.gmra.mxu1 %vm40_vm4, %v385_v38 }
 0x44c   :  { %v458_v41 = vpop.f32.mrf.mxu1 }
 0x44d   :  { %618 = vmatmul.mubr.msk.f32.vlgmr.msra.gmra.mxu0 %vm141_vm2, %v458_v41 }
 0x44e   :  { %v612_v42 = vpop.f32.mrf.mxu1 }
 0x50d   :  { %v540_v45 = vpop.f32.mrf.mxu0 }
 0x50e   :  { %v541_v46 = vadd.f32 %v561_v44, %v540_v45 }
 0x50f   :  { %v619_v47 = vpop.f32.mrf.mxu0 }
 0x510   :  { %v546_v48 = vsel %vm44_vm5, %v541_v46, 0.0 }
 0x511   :  { %547 = vst.msk [vmem:[%s785_s11] sm:$0xff] %vm141_vm2, %v546_v48 }

// kernel: grcnn_forward.22
= control target key start
LH: loop header
LB: loop body
LE: loop exit
PB: predicated region body
PF: predicated region fallthrough
CT: control target
= control target key end

     0   :  { %v635_v0 = vmov 0.0   ;;  %vm636_vm0 = vmmov 0   ;;  %vm55_vm1 = vcmask 130048   ;;  %vm141_vm2 = vcmask 195584   ;;  %s790_s3 = inlined_call_operand.vmem [shape: f32[16,24], index: 3, kind: input, shape index: {}]   ;;  %s791_s1 = inlined_call_operand.vmem [shape: f32[8,16], index: 1, kind: input, shape index: {}]   ;;  %s792_s5 = inlined_call_operand.vmem [shape: f32[24,24], index: 5, kind: input, shape index: {}]   ;;  %s793_s7 = inlined_call_operand.vmem [shape: f32[24,48], index: 7, kind: input, shape index: {}]   ;;  %s794_s0 = inlined_call_operand.vmem [shape: f32[8,24], index: 0, kind: input, shape index: {}]   ;;  %s795_s4 = inlined_call_operand.vmem [shape: f32[1,24], index: 4, kind: input, shape index: {}]   ;;  %s796_s6 = inlined_call_operand.vmem [shape: f32[1,24], index: 6, kind: input, shape index: {}]   ;;  %s797_s8 = inlined_call_operand.vmem [shape: f32[1,48], index: 8, kind: input, shape index: {}]   ;;  %s798_s2 = inlined_call_operand.vmem [shape: f32[8,8], index: 2, kind: input, shape index: {}]   ;;  %s799_s9 = inlined_call_operand.vmem [shape: f32[24,24], index: 9, kind: input, shape index: {}]   ;;  %s800_s10 = inlined_call_operand.vmem [shape: f32[1,24], index: 10, kind: input, shape index: {}]   ;;  %s801_s11 = inlined_call_operand.vmem [shape: f32[8,24], index: 11, kind: output, shape index: {}]  }
   0x1   :  { %584 = vmatprep.subr.mxu0 %v635_v0  ;;  %v47_v1 = vld [vmem:[%s790_s3 + $0x8] sm:$0xff]  ;;  %v46_v2 = vld [vmem:[%s790_s3] sm:$0xff]  ;;  %588 = vmatprep.mubr.msk.f32.mxu0 %vm636_vm0, %v635_v0  ;;  %v133_v4 = vld [vmem:[%s792_s5 + $0x10] sm:$0xff]  ;;  %vm40_vm4 = vcmask 64512  }
   0x2   :  { %585 = vmatpush3.msra.mxu0 %v47_v1  ;;  %v45_v3 = vld [vmem:[%s791_s1] sm:$0xff]  ;;  %591 = vmatprep.subr.mxu1 %v635_v0  ;;  %v218_v5 = vld [vmem:[%s793_s7 + $0x10] sm:$0xff]  ;;  %v132_v6 = vld [vmem:[%s792_s5 + $0x8] sm:$0xff] }
   0x3   :  { %586 = vmatprep.subr.mxu0 %v635_v0  ;;  %597 = vmatprep.mubr.msk.f32.mxu1 %vm636_vm0, %v635_v0  ;;  %v217_v7 = vld [vmem:[%s793_s7 + $0x8] sm:$0xff]  ;;  %v131_v8 = vld [vmem:[%s792_s5] sm:$0xff]  ;;  %v465_v36 = vld [vmem:[%s799_s9 + $0x10] sm:$0xff] }
   0x4   :  { %587 = vmatpush3.msra.mxu0 %v46_v2  ;;  %592 = vmatpush3.msra.mxu1 %v133_v4  ;;  %v216_v9 = vld [vmem:[%s793_s7] sm:$0xff]  ;;  %v464_v37 = vld [vmem:[%s799_s9 + $0x8] sm:$0xff] }
   0x5   :  { %589 = vmatmul.mubr.msk.f32.vlgmr.msra.gmra.mxu0 %vm55_vm1, %v45_v3  ;;  %600 = vmatprep.subr.mxu0 %v635_v0  ;;  %v130_v10 = vld [vmem:[%s794_s0] sm:$0xff] }
   0x6   :  { %606 = vmatprep.mubr.msk.f32.mxu0 %vm636_vm0, %v635_v0  ;;  %601 = vmatpush3.msra.mxu0 %v218_v5  ;;  %v554_v11 = vld [vmem:[%s795_s4] ss:$0 sm:$0xff]  ;;  %s637_s4 = smov 104  }
   0x7   :  { %593 = vmatprep.subr.mxu1 %v635_v0  ;;  %602 = vmatprep.subr.mxu0 %v635_v0  ;;  %v556_v18 = vld [vmem:[%s796_s6] ss:$0 sm:$0xff] }
   0x8   :  { %594 = vmatpush3.msra.mxu1 %v132_v6  ;;  %603 = vmatpush3.msra.mxu0 %v217_v7  ;;  %v558_v20 = vld [vmem:[%s797_s8] ss:$0 sm:$0xff] }
   0x9   :  { %595 = vmatprep.subr.mxu1 %v635_v0  ;;  %604 = vmatprep.subr.mxu0 %v635_v0  ;;  %v38_v26 = vld [vmem:[%s798_s2] sm:$0xff] }
   0xa   :  { %596 = vmatpush3.msra.mxu1 %v131_v8  ;;  %605 = vmatpush3.msra.mxu0 %v216_v9  ;;  %vm39_vm3 = vcmp.gt.f32.partialorder %v38_v26, 0.0  ;;  %v463_v41 = vld [vmem:[%s799_s9] sm:$0xff]  ;;  %v41_v42 = vsel %vm40_vm4, %v38_v26, 0.0 }
   0xb   :  { %598 = vmatmul.mubr.msk.f32.vlgmr.msra.gmra.mxu1 %vm141_vm2, %v130_v10  ;;  %609 = vmatprep.subr.mxu1 %v635_v0  ;;  %v563_v46 = vld [vmem:[%s800_s10] ss:$0 sm:$0xff] }
   0xc   :  { %611 = vmatprep.mubr.msk.f32.mxu1 %vm636_vm0, %v635_v0  ;;  %614 = vmatprep.subr.mxu0 %v635_v0 }
  0xc5   :  { %v125_v12 = vpop.f32.mrf.mxu0 }
  0xc6   :  { %v126_v13 = vadd.f32 %v554_v11, %v125_v12 }
  0xc7   :  { %v590_v14 = vpop.f32.mrf.mxu0 }
  0xc8   :  { %v129_v15 = vmax.f32 %v126_v13, 0.0 }
  0xca   :  { %607 = vmatmul.mubr.msk.f32.vlgmr.msra.gmra.mxu0 %vm141_vm2, %v129_v15 }
  0xcb   :  { %616 = vmatprep.mubr.msk.f32.mxu0 %vm636_vm0, %v635_v0  ;;  %v211_v16 = vpop.f32.mrf.mxu1 }
  0xcc   :  { %v212_v19 = vadd.f32 %v556_v18, %v211_v16 }
  0xcd   :  { %v599_v17 = vpop.f32.mrf.mxu1 }
  0xce   :  { %v215_v23 = vmul.f32 0.20412415, %v212_v19 }
 0x18a   :  { %v295_v21 = vpop.f32.mrf.mxu0 }
 0x18b   :  { %v296_v22 = vadd.f32 %v558_v20, %v295_v21 }
 0x18c   :  { %v608_v24 = vpop.f32.mrf.mxu0 }
 0x18d   :  { %387 = vrot.lane.b32.xlu1 %v296_v22, %s637_s4  ;;  %610 = vmatpush3.xpose.msk.msra.mxu1 %vm141_vm2, %v296_v22 }
 0x18e   :  { %619 = vmatprep.subr.mxu1 %v635_v0 }
 0x190   :  { %612 = vmatmul.mubr.msk.f32.vlgmr.msra.gmra.mxu1 %vm141_vm2, %v215_v23 }
 0x191   :  { %625 = vmatprep.mubr.msk.f32.mxu1 %vm636_vm0, %v635_v0  ;;  %620 = vmatpush3.msra.mxu1 %v465_v36 }
 0x192   :  { %621 = vmatprep.subr.mxu1 %v635_v0 }
 0x193   :  { %622 = vmatpush3.msra.mxu1 %v464_v37 }
 0x194   :  { %623 = vmatprep.subr.mxu1 %v635_v0 }
 0x195   :  { %624 = vmatpush3.msra.mxu1 %v463_v41 }
 0x1b1   :  { %42 = vadd.xlane.f32.xlu1 %v41_v42 }
 0x1ff   :  { %v388_v25 = vpop.permute.xlu1 %387 }
 0x200   :  { %615 = vmatpush3.msra.mxu0 %v388_v25 }
 0x23a   :  { %v43_v45 = vpop.xlane.xlu1 %42 }
 0x23b   :  { %vm44_vm5 = vcmp.gt.f32.partialorder %v43_v45, 0.0 }
 0x250   :  { %v371_v27 = vpop.f32.mrf.mxu1 }
 0x251   :  { %v375_v28 = vsel %vm39_vm3, %v371_v27, -1e+30 }
 0x252   :  { %v613_v29 = vpop.f32.mrf.mxu1  ;;  %v376_v30 = vsel %vm40_vm4, %v375_v28, -inf }
 0x253   :  { %377 = vmax.xlane.f32.xlu0 %v376_v30 }
 0x2dc   :  { %v378_v31 = vpop.xlane.xlu0 %377 }
 0x2dd   :  { %v379_v32 = vsub.f32 %v375_v28, %v378_v31 }
 0x2df   :  { %v380_v33 = vmul.f32 1.442695, %v379_v32 }
 0x2e1   :  { %631 = vpow2.f32 %v380_v33 }
 0x2ee   :  { %v632_v34 = vpop.eup %631 }
 0x2ef   :  { %v382_v35 = vsel %vm40_vm4, %v632_v34, 0.0 }
 0x2f0   :  { %383 = vadd.xlane.f32.xlu0 %v382_v35 }
 0x379   :  { %v384_v38 = vpop.xlane.xlu0 %383 }
 0x37a   :  { %633 = vrcp.f32 %v384_v38 }
 0x387   :  { %v634_v39 = vpop.eup %633 }
 0x388   :  { %v386_v40 = vmul.f32 %v634_v39, %v632_v34 }
 0x38a   :  { %617 = vmatmul.mubr.msk.f32.vlgmr.msra.gmra.mxu0 %vm40_vm4, %v386_v40 }
 0x44a   :  { %v459_v43 = vpop.f32.mrf.mxu0 }
 0x44b   :  { %626 = vmatmul.mubr.msk.f32.vlgmr.msra.gmra.mxu1 %vm141_vm2, %v459_v43 }
 0x44c   :  { %v618_v44 = vpop.f32.mrf.mxu0 }
 0x50b   :  { %v542_v47 = vpop.f32.mrf.mxu1 }
 0x50c   :  { %v543_v48 = vadd.f32 %v563_v46, %v542_v47 }
 0x50d   :  { %v627_v49 = vpop.f32.mrf.mxu1 }
 0x50e   :  { %v548_v50 = vsel %vm44_vm5, %v543_v48, 0.0 }
 0x50f   :  { %549 = vst.msk [vmem:[%s801_s11] sm:$0xff] %vm141_vm2, %v548_v50 }

// kernel: grcnn_forward.19
= control target key start
LH: loop header
LB: loop body
LE: loop exit
PB: predicated region body
PF: predicated region fallthrough
CT: control target
= control target key end

     0   :  { %v622_v0 = vmov 0.0   ;;  %vm623_vm0 = vmmov 0   ;;  %vm55_vm1 = vcmask 130048   ;;  %vm40_vm3 = vcmask 64512   ;;  %s766_s3 = inlined_call_operand.vmem [shape: f32[16,16], index: 3, kind: input, shape index: {}]   ;;  %s767_s1 = inlined_call_operand.vmem [shape: f32[8,16], index: 1, kind: input, shape index: {}, may-alias: {0,1}]   ;;  %s768_s5 = inlined_call_operand.vmem [shape: f32[16,16], index: 5, kind: input, shape index: {}]   ;;  %s769_s7 = inlined_call_operand.vmem [shape: f32[16,32], index: 7, kind: input, shape index: {}]   ;;  %s770_s0 = inlined_call_operand.vmem [shape: f32[8,16], index: 0, kind: input, shape index: {}, may-alias: {0,1}]   ;;  %s771_s4 = inlined_call_operand.vmem [shape: f32[1,16], index: 4, kind: input, shape index: {}]   ;;  %s772_s6 = inlined_call_operand.vmem [shape: f32[1,16], index: 6, kind: input, shape index: {}]   ;;  %s773_s8 = inlined_call_operand.vmem [shape: f32[1,32], index: 8, kind: input, shape index: {}]   ;;  %s774_s2 = inlined_call_operand.vmem [shape: f32[8,8], index: 2, kind: input, shape index: {}]   ;;  %s775_s9 = inlined_call_operand.vmem [shape: f32[16,16], index: 9, kind: input, shape index: {}]   ;;  %s776_s10 = inlined_call_operand.vmem [shape: f32[1,16], index: 10, kind: input, shape index: {}]   ;;  %s777_s11 = inlined_call_operand.vmem [shape: f32[8,16], index: 11, kind: output, shape index: {}]  }
   0x1   :  { %577 = vmatprep.subr.mxu0 %v622_v0  ;;  %v47_v1 = vld [vmem:[%s766_s3 + $0x8] sm:$0xff]  ;;  %v46_v2 = vld [vmem:[%s766_s3] sm:$0xff]  ;;  %581 = vmatprep.mubr.msk.f32.mxu0 %vm623_vm0, %v622_v0 }
   0x2   :  { %578 = vmatpush3.msra.mxu0 %v47_v1  ;;  %v45_v3 = vld [vmem:[%s767_s1] sm:$0xff]  ;;  %584 = vmatprep.subr.mxu1 %v622_v0  ;;  %v132_v4 = vld [vmem:[%s768_s5 + $0x8] sm:$0xff] }
   0x3   :  { %579 = vmatprep.subr.mxu0 %v622_v0  ;;  %588 = vmatprep.mubr.msk.f32.mxu1 %vm623_vm0, %v622_v0  ;;  %v215_v5 = vld [vmem:[%s769_s7 + $0x8] sm:$0xff]  ;;  %v131_v6 = vld [vmem:[%s768_s5] sm:$0xff] }
   0x4   :  { %580 = vmatpush3.msra.mxu0 %v46_v2  ;;  %585 = vmatpush3.msra.mxu1 %v132_v4  ;;  %v214_v7 = vld [vmem:[%s769_s7] sm:$0xff]  ;;  %v461_v34 = vld [vmem:[%s775_s9 + $0x8] sm:$0xff] }
   0x5   :  { %582 = vmatmul.mubr.msk.f32.vlgmr.msra.gmra.mxu0 %vm55_vm1, %v45_v3  ;;  %591 = vmatprep.subr.mxu0 %v622_v0  ;;  %v130_v8 = vld [vmem:[%s770_s0] sm:$0xff] }
   0x6   :  { %595 = vmatprep.mubr.msk.f32.mxu0 %vm623_vm0, %v622_v0  ;;  %592 = vmatpush3.msra.mxu0 %v215_v5  ;;  %v550_v9 = vld [vmem:[%s771_s4] ss:$0 sm:$0xff]  ;;  %s624_s4 = smov 112  }
   0x7   :  { %586 = vmatprep.subr.mxu1 %v622_v0  ;;  %593 = vmatprep.subr.mxu0 %v622_v0  ;;  %v552_v16 = vld [vmem:[%s772_s6] ss:$0 sm:$0xff] }
   0x8   :  { %587 = vmatpush3.msra.mxu1 %v131_v6  ;;  %594 = vmatpush3.msra.mxu0 %v214_v7  ;;  %v554_v18 = vld [vmem:[%s773_s8] ss:$0 sm:$0xff] }
   0x9   :  { %589 = vmatmul.mubr.msk.f32.vlgmr.msra.gmra.mxu1 %vm55_vm1, %v130_v8  ;;  %598 = vmatprep.subr.mxu1 %v622_v0  ;;  %v38_v24 = vld [vmem:[%s774_s2] sm:$0xff] }
   0xa   :  { %600 = vmatprep.mubr.msk.f32.mxu1 %vm623_vm0, %v622_v0  ;;  %603 = vmatprep.subr.mxu0 %v622_v0  ;;  %vm39_vm2 = vcmp.gt.f32.partialorder %v38_v24, 0.0  ;;  %v460_v38 = vld [vmem:[%s775_s9] sm:$0xff]  ;;  %v41_v39 = vsel %vm40_vm3, %v38_v24, 0.0 }
   0xb   :  { %v559_v43 = vld [vmem:[%s776_s10] ss:$0 sm:$0xff] }
  0xc5   :  { %v125_v10 = vpop.f32.mrf.mxu0 }
  0xc6   :  { %v126_v11 = vadd.f32 %v550_v9, %v125_v10 }
  0xc7   :  { %v583_v12 = vpop.f32.mrf.mxu0 }
  0xc8   :  { %v129_v13 = vmax.f32 %v126_v11, 0.0 }
  0xc9   :  { %v209_v14 = vpop.f32.mrf.mxu1 }
  0xca   :  { %596 = vmatmul.mubr.msk.f32.vlgmr.msra.gmra.mxu0 %vm55_vm1, %v129_v13  ;;  %v210_v17 = vadd.f32 %v552_v16, %v209_v14 }
  0xcb   :  { %605 = vmatprep.mubr.msk.f32.mxu0 %vm623_vm0, %v622_v0  ;;  %v590_v15 = vpop.f32.mrf.mxu1 }
  0xcc   :  { %v213_v21 = vmul.f32 0.25, %v210_v17 }
 0x18a   :  { %v292_v19 = vpop.f32.mrf.mxu0 }
 0x18b   :  { %v293_v20 = vadd.f32 %v554_v18, %v292_v19 }
 0x18c   :  { %v597_v22 = vpop.f32.mrf.mxu0 }
 0x18d   :  { %384 = vrot.lane.b32.xlu1 %v293_v20, %s624_s4  ;;  %599 = vmatpush3.xpose.msk.msra.mxu1 %vm55_vm1, %v293_v20 }
 0x18e   :  { %608 = vmatprep.subr.mxu1 %v622_v0 }
 0x190   :  { %601 = vmatmul.mubr.msk.f32.vlgmr.msra.gmra.mxu1 %vm55_vm1, %v213_v21 }
 0x191   :  { %612 = vmatprep.mubr.msk.f32.mxu1 %vm623_vm0, %v622_v0  ;;  %609 = vmatpush3.msra.mxu1 %v461_v34 }
 0x192   :  { %610 = vmatprep.subr.mxu1 %v622_v0 }
 0x193   :  { %611 = vmatpush3.msra.mxu1 %v460_v38 }
 0x1b1   :  { %42 = vadd.xlane.f32.xlu1 %v41_v39 }
 0x1ff   :  { %v385_v23 = vpop.permute.xlu1 %384 }
 0x200   :  { %604 = vmatpush3.msra.mxu0 %v385_v23 }
 0x23a   :  { %v43_v42 = vpop.xlane.xlu1 %42 }
 0x23b   :  { %vm44_vm4 = vcmp.gt.f32.partialorder %v43_v42, 0.0 }
 0x250   :  { %v368_v25 = vpop.f32.mrf.mxu1 }
 0x251   :  { %v372_v26 = vsel %vm39_vm2, %v368_v25, -1e+30 }
 0x252   :  { %v602_v27 = vpop.f32.mrf.mxu1  ;;  %v373_v28 = vsel %vm40_vm3, %v372_v26, -inf }
 0x253   :  { %374 = vmax.xlane.f32.xlu0 %v373_v28 }
 0x2dc   :  { %v375_v29 = vpop.xlane.xlu0 %374 }
 0x2dd   :  { %v376_v30 = vsub.f32 %v372_v26, %v375_v29 }
 0x2df   :  { %v377_v31 = vmul.f32 1.442695, %v376_v30 }
 0x2e1   :  { %618 = vpow2.f32 %v377_v31 }
 0x2ee   :  { %v619_v32 = vpop.eup %618 }
 0x2ef   :  { %v379_v33 = vsel %vm40_vm3, %v619_v32, 0.0 }
 0x2f0   :  { %380 = vadd.xlane.f32.xlu0 %v379_v33 }
 0x379   :  { %v381_v35 = vpop.xlane.xlu0 %380 }
 0x37a   :  { %620 = vrcp.f32 %v381_v35 }
 0x387   :  { %v621_v36 = vpop.eup %620 }
 0x388   :  { %v383_v37 = vmul.f32 %v621_v36, %v619_v32 }
 0x38a   :  { %606 = vmatmul.mubr.msk.f32.vlgmr.msra.gmra.mxu0 %vm40_vm3, %v383_v37 }
 0x44a   :  { %v456_v40 = vpop.f32.mrf.mxu0 }
 0x44b   :  { %613 = vmatmul.mubr.msk.f32.vlgmr.msra.gmra.mxu1 %vm55_vm1, %v456_v40 }
 0x44c   :  { %v607_v41 = vpop.f32.mrf.mxu0 }
 0x50b   :  { %v538_v44 = vpop.f32.mrf.mxu1 }
 0x50c   :  { %v539_v45 = vadd.f32 %v559_v43, %v538_v44 }
 0x50d   :  { %v614_v46 = vpop.f32.mrf.mxu1 }
 0x50e   :  { %v544_v47 = vsel %vm44_vm4, %v539_v45, 0.0 }
 0x50f   :  { %545 = vst.msk [vmem:[%s777_s11] sm:$0xff] %vm55_vm1, %v544_v47 }

</bundles_post_ra>
